<compile_context>
chip_gen: v5e
topology: v5e:2x2
jax: 0.10.0
libtpu: 0.0.40
codegen_flags: <defaults>
</compile_context>

<pallas_src>
import functools
import math

import jax
import jax.numpy as jnp
from jax.experimental import pallas as pl
from jax.experimental.pallas import tpu as pltpu


def decoder_layer_kernel(dec_ref, enc_ref, sbias_ref, cbias_ref,
                         wqkv1_ref, bqkv1_ref, wo1_ref, bo1_ref, ln1g_ref, ln1b_ref,
                         wq2_ref, bq2_ref, wkv2_ref, bkv2_ref, wo2_ref, bo2_ref,
                         ln2g_ref, ln2b_ref,
                         w1_ref, b1_ref, w2_ref, b2_ref, ln3g_ref, ln3b_ref,
                         out_ref, sprob_ref, cprob_ref,
                         *, n_head, block_b, s_dec, s_enc, eps):
    E = dec_ref.shape[-1]
    dh = E // n_head
    scale = 1.0 / math.sqrt(dh)

    x_bf = dec_ref[...].reshape(block_b * s_dec, E)      # (Nd, E) bf16 from HBM
    enc_bf = enc_ref[...].reshape(block_b * s_enc, E)    # (Ne, E) bf16
    x = x_bf.astype(jnp.float32)                         # f32 for residual / LN

    def matmul(a, w_ref, b_ref):
        # bf16 MXU matmul with f32 accumulation; bias added in f32.
        out = jnp.dot(a.astype(jnp.bfloat16), w_ref[...],
                      preferred_element_type=jnp.float32)
        return out + b_ref[...]

    def layer_norm(v, g_ref, b_ref):
        mu = jnp.mean(v, axis=-1, keepdims=True)
        var = jnp.mean((v - mu) ** 2, axis=-1, keepdims=True)
        return (v - mu) * jax.lax.rsqrt(var + eps) * g_ref[...] + b_ref[...]

    def attention(q_all, k_all, v_all, bias_ref, prob_ref, wo_ref, bo_ref, s_q, s_k):
        # q_all: (block_b*s_q, E) f32; k_all/v_all: (block_b*s_k, E) f32
        # 1/sqrt(dh) folded into Q once; operands cast to bf16 once.
        q3 = (q_all * scale).astype(jnp.bfloat16).reshape(block_b, s_q, E)
        k3 = k_all.astype(jnp.bfloat16).reshape(block_b, s_k, E)
        v3 = v_all.astype(jnp.bfloat16).reshape(block_b, s_k, E)
        bias = bias_ref[...].astype(jnp.float32)          # (block_b, s_q, s_k), hoisted
        ctx_heads = []
        # TODO(synk): for large sequence lengths add a k-block online-softmax loop
        # here instead of materializing full (s_q, s_k) scores per head.
        for h in range(n_head):                           # short head loop; batch dim
            sl = slice(h * dh, (h + 1) * dh)              # is batched inside einsum
            scores = jnp.einsum('bqd,bkd->bqk', q3[:, :, sl], k3[:, :, sl],
                                preferred_element_type=jnp.float32) + bias
            smax = jnp.max(scores, axis=-1, keepdims=True)
            ex = jnp.exp(scores - smax)
            inv = pl.reciprocal(jnp.sum(ex, axis=-1, keepdims=True), approx=True)
            probs = ex * inv                               # (block_b, s_q, s_k) f32
            prob_ref[:, h, :, :] = probs.astype(prob_ref.dtype)   # bf16 side output
            ctx_heads.append(jnp.einsum('bqk,bkd->bqd',
                                        probs.astype(jnp.bfloat16), v3[:, :, sl],
                                        preferred_element_type=jnp.float32))
        ctx = jnp.concatenate(ctx_heads, axis=-1)          # (block_b, s_q, E)
        return matmul(ctx.reshape(block_b * s_q, E), wo_ref, bo_ref)  # one Wo matmul

    # ---- masked self-attention + Add & LayerNorm 1 --------------------------
    qkv = matmul(x_bf, wqkv1_ref, bqkv1_ref)               # fused QKV (Nd, 3E) f32
    attn1 = attention(qkv[:, 0:E], qkv[:, E:2 * E], qkv[:, 2 * E:3 * E],
                      sbias_ref, sprob_ref, wo1_ref, bo1_ref, s_dec, s_dec)
    out1 = layer_norm(x + attn1, ln1g_ref, ln1b_ref)

    # ---- encoder-decoder cross-attention + Add & LayerNorm 2 ----------------
    q2 = matmul(out1, wq2_ref, bq2_ref)                    # (Nd, E)
    kv2 = matmul(enc_bf, wkv2_ref, bkv2_ref)                # fused KV (Ne, 2E)
    attn2 = attention(q2, kv2[:, 0:E], kv2[:, E:2 * E],
                      cbias_ref, cprob_ref, wo2_ref, bo2_ref, s_dec, s_enc)
    out2 = layer_norm(out1 + attn2, ln2g_ref, ln2b_ref)

    # ---- position-wise feed-forward + Add & LayerNorm 3 ---------------------
    h1 = jnp.maximum(matmul(out2, w1_ref, b1_ref), 0.0)     # ReLU in f32
    ff = matmul(h1, w2_ref, b2_ref)
    out3 = layer_norm(ff + out2, ln3g_ref, ln3b_ref)
    out_ref[...] = out3.reshape(block_b, s_dec, E).astype(out_ref.dtype)


WEIGHT_ORDER = ("wqkv1", "bqkv1", "wo1", "bo1", "ln1_g", "ln1_b",
                "wq2", "bq2", "wkv2", "bkv2", "wo2", "bo2", "ln2_g", "ln2_b",
                "w1", "b1", "w2", "b2", "ln3_g", "ln3_b")


def _vmem_bytes_estimate(block_b, s_dec, s_enc, emb_dim, d_ff, n_head):
    """Rough per-grid-step VMEM footprint (double-buffered I/O + live f32)."""
    nd, ne = block_b * s_dec, block_b * s_enc
    f32, bf16 = 4, 2
    in_bytes = 2 * bf16 * (nd * emb_dim + ne * emb_dim
                           + block_b * s_dec * (s_dec + s_enc))
    out_bytes = 2 * (f32 * nd * emb_dim
                     + bf16 * block_b * n_head * s_dec * (s_dec + s_enc))
    w_bytes = 2 * (bf16 * emb_dim * (3 * emb_dim + 2 * emb_dim + 2 * emb_dim + d_ff)
                   + bf16 * d_ff * emb_dim
                   + f32 * (15 * emb_dim + d_ff))
    live = f32 * (nd * (3 * emb_dim + d_ff + 4 * emb_dim)
                  + 3 * block_b * s_dec * max(s_dec, s_enc))
    return in_bytes + out_bytes + w_bytes + live


def _pick_block_b(B, s_dec, s_enc, emb_dim, d_ff, n_head, budget_bytes=40 << 20):
    """Largest batch block that fits the VMEM budget while keeping >=2 grid
    steps (software pipelining + v7x megacore sharding) when the batch allows."""
    divisors = [d for d in range(1, B + 1) if B % d == 0]
    fits = [d for d in divisors
            if _vmem_bytes_estimate(d, s_dec, s_enc, emb_dim, d_ff, n_head)
            <= budget_bytes] or [1]
    pipelined = [d for d in fits if B // d >= 2]
    return max(pipelined) if pipelined else max(fits)


def decoder_layer(dec_input, enc_output, self_dec_mask, enc_dec_mask,
                  params, n_head, eps, block_b=None):
    B, Sd, E = dec_input.shape
    Se = enc_output.shape[1]
    d_ff = params["w1"].shape[-1]
    if block_b is None:
        block_b = _pick_block_b(B, Sd, Se, E, d_ff, n_head)
    assert B % block_b == 0, "block_b must divide the batch size"
    grid = (B // block_b,)

    # bf16 activations in HBM (halves read traffic); kept 3-D so the trailing
    # two block dims equal the full array dims (no (8,128)/dtype-tiling issues).
    dec3d = dec_input.astype(jnp.bfloat16)
    enc3d = enc_output.astype(jnp.bfloat16)
    # masked_fill(mask, -1e9) -> additive bias, bf16 (half the mask bytes).
    # TODO(synk): when the self mask is known-causal, generate it in-kernel from
    # broadcasted_iota and pass only a (B, S_enc) pad row for cross-attention.
    sbias = jnp.where(self_dec_mask != 0, -1e9, 0.0).astype(jnp.bfloat16)
    cbias = jnp.where(enc_dec_mask != 0, -1e9, 0.0).astype(jnp.bfloat16)

    weights = [params[name] for name in WEIGHT_ORDER]

    def full_spec(arr):
        nd = arr.ndim
        # constant block index across the grid -> Pallas only DMAs it once.
        return pl.BlockSpec(arr.shape, lambda i, _nd=nd: (0,) * _nd)

    in_specs = [
        pl.BlockSpec((block_b, Sd, E), lambda i: (i, 0, 0)),
        pl.BlockSpec((block_b, Se, E), lambda i: (i, 0, 0)),
        pl.BlockSpec((block_b, Sd, Sd), lambda i: (i, 0, 0)),
        pl.BlockSpec((block_b, Sd, Se), lambda i: (i, 0, 0)),
    ] + [full_spec(w) for w in weights]

    out_shape = (jax.ShapeDtypeStruct((B, Sd, E), jnp.float32),
                 jax.ShapeDtypeStruct((B, n_head, Sd, Sd), jnp.bfloat16),
                 jax.ShapeDtypeStruct((B, n_head, Sd, Se), jnp.bfloat16))
    out_specs = (pl.BlockSpec((block_b, Sd, E), lambda i: (i, 0, 0)),
                 pl.BlockSpec((block_b, n_head, Sd, Sd), lambda i: (i, 0, 0, 0)),
                 pl.BlockSpec((block_b, n_head, Sd, Se), lambda i: (i, 0, 0, 0)))

    est = _vmem_bytes_estimate(block_b, Sd, Se, E, d_ff, n_head)
    vmem_limit = int(min(64 * 1024 * 1024, max(32 * 1024 * 1024, 2 * est)))

    kernel = functools.partial(decoder_layer_kernel, n_head=n_head,
                               block_b=block_b, s_dec=Sd, s_enc=Se, eps=eps)
    out3d, sprob, cprob = pl.pallas_call(
        kernel,
        grid=grid,
        in_specs=in_specs,
        out_specs=out_specs,
        out_shape=out_shape,
        compiler_params=pltpu.CompilerParams(
            dimension_semantics=("parallel",),   # batch blocks are independent
            vmem_limit_bytes=vmem_limit),
    )(dec3d, enc3d, sbias, cbias, *weights)
    return out3d, sprob, cprob


def init_decoder_layer_params(key, emb_dim, d_ff):
    """Random DecoderLayer parameters, pre-fused for the kernel: self-attn QKV
    fused into one (E,3E) weight, cross-attn K/V fused into one (E,2E) weight,
    all matmul weights stored bf16 (MXU-native), biases/LayerNorm params f32."""
    shapes = {
        "wq1": (emb_dim, emb_dim), "wk1": (emb_dim, emb_dim), "wv1": (emb_dim, emb_dim),
        "wo1": (emb_dim, emb_dim),
        "wq2": (emb_dim, emb_dim), "wk2": (emb_dim, emb_dim), "wv2": (emb_dim, emb_dim),
        "wo2": (emb_dim, emb_dim),
        "w1": (emb_dim, d_ff), "w2": (d_ff, emb_dim),
        "bq1": (1, emb_dim), "bk1": (1, emb_dim), "bv1": (1, emb_dim), "bo1": (1, emb_dim),
        "bq2": (1, emb_dim), "bk2": (1, emb_dim), "bv2": (1, emb_dim), "bo2": (1, emb_dim),
        "b1": (1, d_ff), "b2": (1, emb_dim),
    }
    items = sorted(shapes.items())
    keys = jax.random.split(key, len(items))
    raw = {}
    for k_, (name, shape) in zip(keys, items):
        s = 0.05 if name.startswith("w") else 0.01
        raw[name] = s * jax.random.normal(k_, shape, jnp.float32)

    bf16 = lambda a: a.astype(jnp.bfloat16)
    ones = lambda n: jnp.ones((1, n), jnp.float32)
    zeros = lambda n: jnp.zeros((1, n), jnp.float32)
    return {
        "wqkv1": bf16(jnp.concatenate([raw["wq1"], raw["wk1"], raw["wv1"]], axis=1)),
        "bqkv1": jnp.concatenate([raw["bq1"], raw["bk1"], raw["bv1"]], axis=1),
        "wo1": bf16(raw["wo1"]), "bo1": raw["bo1"],
        "ln1_g": ones(emb_dim), "ln1_b": zeros(emb_dim),
        "wq2": bf16(raw["wq2"]), "bq2": raw["bq2"],
        "wkv2": bf16(jnp.concatenate([raw["wk2"], raw["wv2"]], axis=1)),
        "bkv2": jnp.concatenate([raw["bk2"], raw["bv2"]], axis=1),
        "wo2": bf16(raw["wo2"]), "bo2": raw["bo2"],
        "ln2_g": ones(emb_dim), "ln2_b": zeros(emb_dim),
        "w1": bf16(raw["w1"]), "b1": raw["b1"],
        "w2": bf16(raw["w2"]), "b2": raw["b2"],
        "ln3_g": ones(emb_dim), "ln3_b": zeros(emb_dim),
    }


if __name__ == "__main__":
    emb_dim, n_head, d_ff = 32, 4, 64
    layernorm_epsilon = 1e-6
    B, S_dec, S_enc = 2, 8, 16

    key = jax.random.PRNGKey(0)
    key, k_dec, k_enc = jax.random.split(key, 3)
    dec_input = jax.random.normal(k_dec, (B, S_dec, emb_dim), jnp.float32)
    enc_output = jax.random.normal(k_enc, (B, S_enc, emb_dim), jnp.float32)

    # decoder self-attention mask: look-ahead (causal) mask, 1.0 = masked
    causal = jnp.triu(jnp.ones((S_dec, S_dec), jnp.float32), k=1)
    self_dec_mask = jnp.broadcast_to(causal, (B, S_dec, S_dec))
    # encoder-decoder mask: pad out the tail of encoder sequence of batch element 1
    enc_pad = jnp.zeros((B, S_enc), jnp.float32).at[1, 12:].set(1.0)
    enc_dec_mask = jnp.broadcast_to(enc_pad[:, None, :], (B, S_dec, S_enc))

    params = init_decoder_layer_params(key, emb_dim, d_ff)

    dec_output, attn_prob, enc_dec_prob = decoder_layer(
        dec_input, enc_output, self_dec_mask, enc_dec_mask,
        params, n_head, layernorm_epsilon)   # block_b auto-derived -> grid=(2,)

    jax.block_until_ready(dec_output)
    jax.block_until_ready(attn_prob)
    jax.block_until_ready(enc_dec_prob)
    print("KERNEL_OK")
</pallas_src>

<mosaic_0001>
module attributes {stable_mosaic.version = 11 : i64} {
  func.func @decoder_layer_kernel(%arg0: i32, %arg1: memref<1x8x32xbf16, #tpu.memory_space<vmem>>, %arg2: memref<1x16x32xbf16, #tpu.memory_space<vmem>>, %arg3: memref<1x8x8xbf16, #tpu.memory_space<vmem>>, %arg4: memref<1x8x16xbf16, #tpu.memory_space<vmem>>, %arg5: memref<32x96xbf16, #tpu.memory_space<vmem>>, %arg6: memref<1x96xf32, #tpu.memory_space<vmem>>, %arg7: memref<32x32xbf16, #tpu.memory_space<vmem>>, %arg8: memref<1x32xf32, #tpu.memory_space<vmem>>, %arg9: memref<1x32xf32, #tpu.memory_space<vmem>>, %arg10: memref<1x32xf32, #tpu.memory_space<vmem>>, %arg11: memref<32x32xbf16, #tpu.memory_space<vmem>>, %arg12: memref<1x32xf32, #tpu.memory_space<vmem>>, %arg13: memref<32x64xbf16, #tpu.memory_space<vmem>>, %arg14: memref<1x64xf32, #tpu.memory_space<vmem>>, %arg15: memref<32x32xbf16, #tpu.memory_space<vmem>>, %arg16: memref<1x32xf32, #tpu.memory_space<vmem>>, %arg17: memref<1x32xf32, #tpu.memory_space<vmem>>, %arg18: memref<1x32xf32, #tpu.memory_space<vmem>>, %arg19: memref<32x64xbf16, #tpu.memory_space<vmem>>, %arg20: memref<1x64xf32, #tpu.memory_space<vmem>>, %arg21: memref<64x32xbf16, #tpu.memory_space<vmem>>, %arg22: memref<1x32xf32, #tpu.memory_space<vmem>>, %arg23: memref<1x32xf32, #tpu.memory_space<vmem>>, %arg24: memref<1x32xf32, #tpu.memory_space<vmem>>, %arg25: memref<1x8x32xf32, #tpu.memory_space<vmem>>, %arg26: memref<1x4x8x8xbf16, #tpu.memory_space<vmem>>, %arg27: memref<1x4x8x16xbf16, #tpu.memory_space<vmem>>) attributes {dimension_semantics = [#tpu.dimension_semantics<parallel>], iteration_bounds = array<i64: 2>, scalar_prefetch = 0 : i64, scratch_operands = 0 : i64, tpu.core_type = #tpu.core_type<tc>, window_params = [{transform_indices = @transform_0, window_bounds = array<i64: 1, 8, 32>}, {transform_indices = @transform_1, window_bounds = array<i64: 1, 16, 32>}, {transform_indices = @transform_2, window_bounds = array<i64: 1, 8, 8>}, {transform_indices = @transform_3, window_bounds = array<i64: 1, 8, 16>}, {pipeline_mode = #tpu.pipeline_mode<synchronous>, transform_indices = @transform_4, window_bounds = array<i64: 32, 96>}, {pipeline_mode = #tpu.pipeline_mode<synchronous>, transform_indices = @transform_5, window_bounds = array<i64: 1, 96>}, {pipeline_mode = #tpu.pipeline_mode<synchronous>, transform_indices = @transform_6, window_bounds = array<i64: 32, 32>}, {pipeline_mode = #tpu.pipeline_mode<synchronous>, transform_indices = @transform_7, window_bounds = array<i64: 1, 32>}, {pipeline_mode = #tpu.pipeline_mode<synchronous>, transform_indices = @transform_8, window_bounds = array<i64: 1, 32>}, {pipeline_mode = #tpu.pipeline_mode<synchronous>, transform_indices = @transform_9, window_bounds = array<i64: 1, 32>}, {pipeline_mode = #tpu.pipeline_mode<synchronous>, transform_indices = @transform_10, window_bounds = array<i64: 32, 32>}, {pipeline_mode = #tpu.pipeline_mode<synchronous>, transform_indices = @transform_11, window_bounds = array<i64: 1, 32>}, {pipeline_mode = #tpu.pipeline_mode<synchronous>, transform_indices = @transform_12, window_bounds = array<i64: 32, 64>}, {pipeline_mode = #tpu.pipeline_mode<synchronous>, transform_indices = @transform_13, window_bounds = array<i64: 1, 64>}, {pipeline_mode = #tpu.pipeline_mode<synchronous>, transform_indices = @transform_14, window_bounds = array<i64: 32, 32>}, {pipeline_mode = #tpu.pipeline_mode<synchronous>, transform_indices = @transform_15, window_bounds = array<i64: 1, 32>}, {pipeline_mode = #tpu.pipeline_mode<synchronous>, transform_indices = @transform_16, window_bounds = array<i64: 1, 32>}, {pipeline_mode = #tpu.pipeline_mode<synchronous>, transform_indices = @transform_17, window_bounds = array<i64: 1, 32>}, {pipeline_mode = #tpu.pipeline_mode<synchronous>, transform_indices = @transform_18, window_bounds = array<i64: 32, 64>}, {pipeline_mode = #tpu.pipeline_mode<synchronous>, transform_indices = @transform_19, window_bounds = array<i64: 1, 64>}, {pipeline_mode = #tpu.pipeline_mode<synchronous>, transform_indices = @transform_20, window_bounds = array<i64: 64, 32>}, {pipeline_mode = #tpu.pipeline_mode<synchronous>, transform_indices = @transform_21, window_bounds = array<i64: 1, 32>}, {pipeline_mode = #tpu.pipeline_mode<synchronous>, transform_indices = @transform_22, window_bounds = array<i64: 1, 32>}, {pipeline_mode = #tpu.pipeline_mode<synchronous>, transform_indices = @transform_23, window_bounds = array<i64: 1, 32>}, {transform_indices = @transform_24, window_bounds = array<i64: 1, 8, 32>}, {transform_indices = @transform_25, window_bounds = array<i64: 1, 4, 8, 8>}, {transform_indices = @transform_26, window_bounds = array<i64: 1, 4, 8, 16>}]} {
    %c0 = arith.constant 0 : index
    %c0_0 = arith.constant 0 : index
    %c0_1 = arith.constant 0 : index
    %0 = vector.load %arg1[%c0, %c0_0, %c0_1] : memref<1x8x32xbf16, #tpu.memory_space<vmem>>, vector<1x8x32xbf16>
    %1 = vector.shape_cast %0 : vector<1x8x32xbf16> to vector<8x32xbf16>
    %c0_2 = arith.constant 0 : index
    %c0_3 = arith.constant 0 : index
    %c0_4 = arith.constant 0 : index
    %2 = vector.load %arg2[%c0_2, %c0_3, %c0_4] : memref<1x16x32xbf16, #tpu.memory_space<vmem>>, vector<1x16x32xbf16>
    %3 = vector.shape_cast %2 : vector<1x16x32xbf16> to vector<16x32xbf16>
    %4 = arith.extf %1 : vector<8x32xbf16> to vector<8x32xf32>
    %c0_5 = arith.constant 0 : index
    %c0_6 = arith.constant 0 : index
    %5 = vector.load %arg5[%c0_5, %c0_6] : memref<32x96xbf16, #tpu.memory_space<vmem>>, vector<32x96xbf16>
    %cst = arith.constant dense<0.000000e+00> : vector<8x96xf32>
    %6 = tpu.matmul %1, %5, %cst {dimension_numbers = #tpu.dot_dimension_numbers<[1], [0], [0], [1], [0, 0, 1, 1], [], []>} : vector<8x32xbf16>, vector<32x96xbf16>, vector<8x96xf32> -> vector<8x96xf32>
    %c0_7 = arith.constant 0 : index
    %c0_8 = arith.constant 0 : index
    %7 = vector.load %arg6[%c0_7, %c0_8] : memref<1x96xf32, #tpu.memory_space<vmem>>, vector<1x96xf32>
    %8 = vector.broadcast %7 : vector<1x96xf32> to vector<8x96xf32>
    %9 = arith.addf %6, %8 : vector<8x96xf32>
    %10 = vector.extract_strided_slice %9 {offsets = [0, 0], sizes = [8, 32], strides = [1, 1]} : vector<8x96xf32> to vector<8x32xf32>
    %11 = vector.extract_strided_slice %9 {offsets = [0, 32], sizes = [8, 32], strides = [1, 1]} : vector<8x96xf32> to vector<8x32xf32>
    %12 = vector.extract_strided_slice %9 {offsets = [0, 64], sizes = [8, 32], strides = [1, 1]} : vector<8x96xf32> to vector<8x32xf32>
    %cst_9 = arith.constant 0.353553385 : f32
    %13 = vector.broadcast %cst_9 : f32 to vector<8x32xf32>
    %14 = arith.mulf %10, %13 : vector<8x32xf32>
    %15 = arith.truncf %14 : vector<8x32xf32> to vector<8x32xbf16>
    %16 = vector.shape_cast %15 : vector<8x32xbf16> to vector<1x8x32xbf16>
    %17 = arith.truncf %11 : vector<8x32xf32> to vector<8x32xbf16>
    %18 = vector.shape_cast %17 : vector<8x32xbf16> to vector<1x8x32xbf16>
    %19 = arith.truncf %12 : vector<8x32xf32> to vector<8x32xbf16>
    %20 = vector.shape_cast %19 : vector<8x32xbf16> to vector<1x8x32xbf16>
    %c0_10 = arith.constant 0 : index
    %c0_11 = arith.constant 0 : index
    %c0_12 = arith.constant 0 : index
    %21 = vector.load %arg3[%c0_10, %c0_11, %c0_12] : memref<1x8x8xbf16, #tpu.memory_space<vmem>>, vector<1x8x8xbf16>
    %22 = arith.extf %21 : vector<1x8x8xbf16> to vector<1x8x8xf32>
    %23 = vector.extract_strided_slice %16 {offsets = [0, 0, 0], sizes = [1, 8, 8], strides = [1, 1, 1]} : vector<1x8x32xbf16> to vector<1x8x8xbf16>
    %24 = vector.extract_strided_slice %18 {offsets = [0, 0, 0], sizes = [1, 8, 8], strides = [1, 1, 1]} : vector<1x8x32xbf16> to vector<1x8x8xbf16>
    "tpu.trace_start"() <{level = 10 : i32, message = "bqd,bkd->bqk"}> : () -> ()
    %cst_13 = arith.constant dense<0.000000e+00> : vector<1x8x8xf32>
    %25 = tpu.matmul %23, %24, %cst_13 {dimension_numbers = #tpu.dot_dimension_numbers<[2], [2], [1], [1], [0, 0, 0, 1, 1, 1], [0], [0]>} : vector<1x8x8xbf16>, vector<1x8x8xbf16>, vector<1x8x8xf32> -> vector<1x8x8xf32>
    "tpu.trace_stop"() : () -> ()
    %26 = arith.addf %25, %22 : vector<1x8x8xf32>
    %cst_14 = arith.constant dense<0xFF800000> : vector<1x8xf32>
    %27 = vector.multi_reduction <maximumf>, %26, %cst_14 [2] : vector<1x8x8xf32> to vector<1x8xf32>
    %28 = vector.shape_cast %27 : vector<1x8xf32> to vector<1x8x1xf32>
    %29 = vector.broadcast %28 : vector<1x8x1xf32> to vector<1x8x8xf32>
    %30 = arith.subf %26, %29 : vector<1x8x8xf32>
    %31 = math.exp %30 : vector<1x8x8xf32>
    %cst_15 = arith.constant dense<0.000000e+00> : vector<1x8xf32>
    %32 = vector.multi_reduction <add>, %31, %cst_15 [2] : vector<1x8x8xf32> to vector<1x8xf32>
    %33 = vector.shape_cast %32 : vector<1x8xf32> to vector<1x8x1xf32>
    %34 = tpu.reciprocal %33 {approx = true} : vector<1x8x1xf32> -> vector<1x8x1xf32>
    %35 = vector.broadcast %34 : vector<1x8x1xf32> to vector<1x8x8xf32>
    %36 = arith.mulf %31, %35 : vector<1x8x8xf32>
    %37 = arith.truncf %36 : vector<1x8x8xf32> to vector<1x8x8xbf16>
    %c0_16 = arith.constant 0 : index
    %c0_17 = arith.constant 0 : index
    %c0_18 = arith.constant 0 : index
    %c0_19 = arith.constant 0 : index
    %38 = vector.load %arg26[%c0_16, %c0_17, %c0_18, %c0_19] : memref<1x4x8x8xbf16, #tpu.memory_space<vmem>>, vector<1x1x8x8xbf16>
    %39 = vector.shape_cast %38 : vector<1x1x8x8xbf16> to vector<1x8x8xbf16>
    %40 = vector.shape_cast %37 : vector<1x8x8xbf16> to vector<1x1x8x8xbf16>
    tpu.vector_store %arg26[%c0_16, %c0_17, %c0_18, %c0_19], %40 {strides = array<i32>} : memref<1x4x8x8xbf16, #tpu.memory_space<vmem>>, vector<1x1x8x8xbf16>,
    %41 = arith.truncf %36 : vector<1x8x8xf32> to vector<1x8x8xbf16>
    %42 = vector.extract_strided_slice %20 {offsets = [0, 0, 0], sizes = [1, 8, 8], strides = [1, 1, 1]} : vector<1x8x32xbf16> to vector<1x8x8xbf16>
    "tpu.trace_start"() <{level = 10 : i32, message = "bqk,bkd->bqd"}> : () -> ()
    %cst_20 = arith.constant dense<0.000000e+00> : vector<1x8x8xf32>
    %43 = tpu.matmul %41, %42, %cst_20 {dimension_numbers = #tpu.dot_dimension_numbers<[2], [1], [1], [2], [0, 0, 0, 1, 1, 2], [0], [0]>} : vector<1x8x8xbf16>, vector<1x8x8xbf16>, vector<1x8x8xf32> -> vector<1x8x8xf32>
    "tpu.trace_stop"() : () -> ()
    %44 = vector.extract_strided_slice %16 {offsets = [0, 0, 8], sizes = [1, 8, 8], strides = [1, 1, 1]} : vector<1x8x32xbf16> to vector<1x8x8xbf16>
    %45 = vector.extract_strided_slice %18 {offsets = [0, 0, 8], sizes = [1, 8, 8], strides = [1, 1, 1]} : vector<1x8x32xbf16> to vector<1x8x8xbf16>
    "tpu.trace_start"() <{level = 10 : i32, message = "bqd,bkd->bqk"}> : () -> ()
    %cst_21 = arith.constant dense<0.000000e+00> : vector<1x8x8xf32>
    %46 = tpu.matmul %44, %45, %cst_21 {dimension_numbers = #tpu.dot_dimension_numbers<[2], [2], [1], [1], [0, 0, 0, 1, 1, 1], [0], [0]>} : vector<1x8x8xbf16>, vector<1x8x8xbf16>, vector<1x8x8xf32> -> vector<1x8x8xf32>
    "tpu.trace_stop"() : () -> ()
    %47 = arith.addf %46, %22 : vector<1x8x8xf32>
    %cst_22 = arith.constant dense<0xFF800000> : vector<1x8xf32>
    %48 = vector.multi_reduction <maximumf>, %47, %cst_22 [2] : vector<1x8x8xf32> to vector<1x8xf32>
    %49 = vector.shape_cast %48 : vector<1x8xf32> to vector<1x8x1xf32>
    %50 = vector.broadcast %49 : vector<1x8x1xf32> to vector<1x8x8xf32>
    %51 = arith.subf %47, %50 : vector<1x8x8xf32>
    %52 = math.exp %51 : vector<1x8x8xf32>
    %cst_23 = arith.constant dense<0.000000e+00> : vector<1x8xf32>
    %53 = vector.multi_reduction <add>, %52, %cst_23 [2] : vector<1x8x8xf32> to vector<1x8xf32>
    %54 = vector.shape_cast %53 : vector<1x8xf32> to vector<1x8x1xf32>
    %55 = tpu.reciprocal %54 {approx = true} : vector<1x8x1xf32> -> vector<1x8x1xf32>
    %56 = vector.broadcast %55 : vector<1x8x1xf32> to vector<1x8x8xf32>
    %57 = arith.mulf %52, %56 : vector<1x8x8xf32>
    %58 = arith.truncf %57 : vector<1x8x8xf32> to vector<1x8x8xbf16>
    %c0_24 = arith.constant 0 : index
    %c1 = arith.constant 1 : index
    %c0_25 = arith.constant 0 : index
    %c0_26 = arith.constant 0 : index
    %59 = vector.load %arg26[%c0_24, %c1, %c0_25, %c0_26] : memref<1x4x8x8xbf16, #tpu.memory_space<vmem>>, vector<1x1x8x8xbf16>
    %60 = vector.shape_cast %59 : vector<1x1x8x8xbf16> to vector<1x8x8xbf16>
    %61 = vector.shape_cast %58 : vector<1x8x8xbf16> to vector<1x1x8x8xbf16>
    tpu.vector_store %arg26[%c0_24, %c1, %c0_25, %c0_26], %61 {strides = array<i32>} : memref<1x4x8x8xbf16, #tpu.memory_space<vmem>>, vector<1x1x8x8xbf16>,
    %62 = arith.truncf %57 : vector<1x8x8xf32> to vector<1x8x8xbf16>
    %63 = vector.extract_strided_slice %20 {offsets = [0, 0, 8], sizes = [1, 8, 8], strides = [1, 1, 1]} : vector<1x8x32xbf16> to vector<1x8x8xbf16>
    "tpu.trace_start"() <{level = 10 : i32, message = "bqk,bkd->bqd"}> : () -> ()
    %cst_27 = arith.constant dense<0.000000e+00> : vector<1x8x8xf32>
    %64 = tpu.matmul %62, %63, %cst_27 {dimension_numbers = #tpu.dot_dimension_numbers<[2], [1], [1], [2], [0, 0, 0, 1, 1, 2], [0], [0]>} : vector<1x8x8xbf16>, vector<1x8x8xbf16>, vector<1x8x8xf32> -> vector<1x8x8xf32>
    "tpu.trace_stop"() : () -> ()
    %65 = vector.extract_strided_slice %16 {offsets = [0, 0, 16], sizes = [1, 8, 8], strides = [1, 1, 1]} : vector<1x8x32xbf16> to vector<1x8x8xbf16>
    %66 = vector.extract_strided_slice %18 {offsets = [0, 0, 16], sizes = [1, 8, 8], strides = [1, 1, 1]} : vector<1x8x32xbf16> to vector<1x8x8xbf16>
    "tpu.trace_start"() <{level = 10 : i32, message = "bqd,bkd->bqk"}> : () -> ()
    %cst_28 = arith.constant dense<0.000000e+00> : vector<1x8x8xf32>
    %67 = tpu.matmul %65, %66, %cst_28 {dimension_numbers = #tpu.dot_dimension_numbers<[2], [2], [1], [1], [0, 0, 0, 1, 1, 1], [0], [0]>} : vector<1x8x8xbf16>, vector<1x8x8xbf16>, vector<1x8x8xf32> -> vector<1x8x8xf32>
    "tpu.trace_stop"() : () -> ()
    %68 = arith.addf %67, %22 : vector<1x8x8xf32>
    %cst_29 = arith.constant dense<0xFF800000> : vector<1x8xf32>
    %69 = vector.multi_reduction <maximumf>, %68, %cst_29 [2] : vector<1x8x8xf32> to vector<1x8xf32>
    %70 = vector.shape_cast %69 : vector<1x8xf32> to vector<1x8x1xf32>
    %71 = vector.broadcast %70 : vector<1x8x1xf32> to vector<1x8x8xf32>
    %72 = arith.subf %68, %71 : vector<1x8x8xf32>
    %73 = math.exp %72 : vector<1x8x8xf32>
    %cst_30 = arith.constant dense<0.000000e+00> : vector<1x8xf32>
    %74 = vector.multi_reduction <add>, %73, %cst_30 [2] : vector<1x8x8xf32> to vector<1x8xf32>
    %75 = vector.shape_cast %74 : vector<1x8xf32> to vector<1x8x1xf32>
    %76 = tpu.reciprocal %75 {approx = true} : vector<1x8x1xf32> -> vector<1x8x1xf32>
    %77 = vector.broadcast %76 : vector<1x8x1xf32> to vector<1x8x8xf32>
    %78 = arith.mulf %73, %77 : vector<1x8x8xf32>
    %79 = arith.truncf %78 : vector<1x8x8xf32> to vector<1x8x8xbf16>
    %c0_31 = arith.constant 0 : index
    %c2 = arith.constant 2 : index
    %c0_32 = arith.constant 0 : index
    %c0_33 = arith.constant 0 : index
    %80 = vector.load %arg26[%c0_31, %c2, %c0_32, %c0_33] : memref<1x4x8x8xbf16, #tpu.memory_space<vmem>>, vector<1x1x8x8xbf16>
    %81 = vector.shape_cast %80 : vector<1x1x8x8xbf16> to vector<1x8x8xbf16>
    %82 = vector.shape_cast %79 : vector<1x8x8xbf16> to vector<1x1x8x8xbf16>
    tpu.vector_store %arg26[%c0_31, %c2, %c0_32, %c0_33], %82 {strides = array<i32>} : memref<1x4x8x8xbf16, #tpu.memory_space<vmem>>, vector<1x1x8x8xbf16>,
    %83 = arith.truncf %78 : vector<1x8x8xf32> to vector<1x8x8xbf16>
    %84 = vector.extract_strided_slice %20 {offsets = [0, 0, 16], sizes = [1, 8, 8], strides = [1, 1, 1]} : vector<1x8x32xbf16> to vector<1x8x8xbf16>
    "tpu.trace_start"() <{level = 10 : i32, message = "bqk,bkd->bqd"}> : () -> ()
    %cst_34 = arith.constant dense<0.000000e+00> : vector<1x8x8xf32>
    %85 = tpu.matmul %83, %84, %cst_34 {dimension_numbers = #tpu.dot_dimension_numbers<[2], [1], [1], [2], [0, 0, 0, 1, 1, 2], [0], [0]>} : vector<1x8x8xbf16>, vector<1x8x8xbf16>, vector<1x8x8xf32> -> vector<1x8x8xf32>
    "tpu.trace_stop"() : () -> ()
    %86 = vector.extract_strided_slice %16 {offsets = [0, 0, 24], sizes = [1, 8, 8], strides = [1, 1, 1]} : vector<1x8x32xbf16> to vector<1x8x8xbf16>
    %87 = vector.extract_strided_slice %18 {offsets = [0, 0, 24], sizes = [1, 8, 8], strides = [1, 1, 1]} : vector<1x8x32xbf16> to vector<1x8x8xbf16>
    "tpu.trace_start"() <{level = 10 : i32, message = "bqd,bkd->bqk"}> : () -> ()
    %cst_35 = arith.constant dense<0.000000e+00> : vector<1x8x8xf32>
    %88 = tpu.matmul %86, %87, %cst_35 {dimension_numbers = #tpu.dot_dimension_numbers<[2], [2], [1], [1], [0, 0, 0, 1, 1, 1], [0], [0]>} : vector<1x8x8xbf16>, vector<1x8x8xbf16>, vector<1x8x8xf32> -> vector<1x8x8xf32>
    "tpu.trace_stop"() : () -> ()
    %89 = arith.addf %88, %22 : vector<1x8x8xf32>
    %cst_36 = arith.constant dense<0xFF800000> : vector<1x8xf32>
    %90 = vector.multi_reduction <maximumf>, %89, %cst_36 [2] : vector<1x8x8xf32> to vector<1x8xf32>
    %91 = vector.shape_cast %90 : vector<1x8xf32> to vector<1x8x1xf32>
    %92 = vector.broadcast %91 : vector<1x8x1xf32> to vector<1x8x8xf32>
    %93 = arith.subf %89, %92 : vector<1x8x8xf32>
    %94 = math.exp %93 : vector<1x8x8xf32>
    %cst_37 = arith.constant dense<0.000000e+00> : vector<1x8xf32>
    %95 = vector.multi_reduction <add>, %94, %cst_37 [2] : vector<1x8x8xf32> to vector<1x8xf32>
    %96 = vector.shape_cast %95 : vector<1x8xf32> to vector<1x8x1xf32>
    %97 = tpu.reciprocal %96 {approx = true} : vector<1x8x1xf32> -> vector<1x8x1xf32>
    %98 = vector.broadcast %97 : vector<1x8x1xf32> to vector<1x8x8xf32>
    %99 = arith.mulf %94, %98 : vector<1x8x8xf32>
    %100 = arith.truncf %99 : vector<1x8x8xf32> to vector<1x8x8xbf16>
    %c0_38 = arith.constant 0 : index
    %c3 = arith.constant 3 : index
    %c0_39 = arith.constant 0 : index
    %c0_40 = arith.constant 0 : index
    %101 = vector.load %arg26[%c0_38, %c3, %c0_39, %c0_40] : memref<1x4x8x8xbf16, #tpu.memory_space<vmem>>, vector<1x1x8x8xbf16>
    %102 = vector.shape_cast %101 : vector<1x1x8x8xbf16> to vector<1x8x8xbf16>
    %103 = vector.shape_cast %100 : vector<1x8x8xbf16> to vector<1x1x8x8xbf16>
    tpu.vector_store %arg26[%c0_38, %c3, %c0_39, %c0_40], %103 {strides = array<i32>} : memref<1x4x8x8xbf16, #tpu.memory_space<vmem>>, vector<1x1x8x8xbf16>,
    %104 = arith.truncf %99 : vector<1x8x8xf32> to vector<1x8x8xbf16>
    %105 = vector.extract_strided_slice %20 {offsets = [0, 0, 24], sizes = [1, 8, 8], strides = [1, 1, 1]} : vector<1x8x32xbf16> to vector<1x8x8xbf16>
    "tpu.trace_start"() <{level = 10 : i32, message = "bqk,bkd->bqd"}> : () -> ()
    %cst_41 = arith.constant dense<0.000000e+00> : vector<1x8x8xf32>
    %106 = tpu.matmul %104, %105, %cst_41 {dimension_numbers = #tpu.dot_dimension_numbers<[2], [1], [1], [2], [0, 0, 0, 1, 1, 2], [0], [0]>} : vector<1x8x8xbf16>, vector<1x8x8xbf16>, vector<1x8x8xf32> -> vector<1x8x8xf32>
    "tpu.trace_stop"() : () -> ()
    %107 = tpu.concatenate %43, %64, %85, %106 in 2 : vector<1x8x8xf32>, vector<1x8x8xf32>, vector<1x8x8xf32>, vector<1x8x8xf32> -> vector<1x8x32xf32>
    %108 = vector.shape_cast %107 : vector<1x8x32xf32> to vector<8x32xf32>
    %109 = arith.truncf %108 : vector<8x32xf32> to vector<8x32xbf16>
    %c0_42 = arith.constant 0 : index
    %c0_43 = arith.constant 0 : index
    %110 = vector.load %arg7[%c0_42, %c0_43] : memref<32x32xbf16, #tpu.memory_space<vmem>>, vector<32x32xbf16>
    %cst_44 = arith.constant dense<0.000000e+00> : vector<8x32xf32>
    %111 = tpu.matmul %109, %110, %cst_44 {dimension_numbers = #tpu.dot_dimension_numbers<[1], [0], [0], [1], [0, 0, 1, 1], [], []>} : vector<8x32xbf16>, vector<32x32xbf16>, vector<8x32xf32> -> vector<8x32xf32>
    %c0_45 = arith.constant 0 : index
    %c0_46 = arith.constant 0 : index
    %112 = vector.load %arg8[%c0_45, %c0_46] : memref<1x32xf32, #tpu.memory_space<vmem>>, vector<1x32xf32>
    %113 = vector.broadcast %112 : vector<1x32xf32> to vector<8x32xf32>
    %114 = arith.addf %111, %113 : vector<8x32xf32>
    %115 = arith.addf %4, %114 : vector<8x32xf32>
    %cst_47 = arith.constant dense<0.000000e+00> : vector<8xf32>
    %116 = vector.multi_reduction <add>, %115, %cst_47 [1] : vector<8x32xf32> to vector<8xf32>
    %117 = vector.shape_cast %116 : vector<8xf32> to vector<8x1xf32>
    %cst_48 = arith.constant 3.200000e+01 : f32
    %118 = vector.broadcast %cst_48 : f32 to vector<8x1xf32>
    %119 = arith.divf %117, %118 : vector<8x1xf32>
    %120 = vector.broadcast %119 : vector<8x1xf32> to vector<8x32xf32>
    %121 = arith.subf %115, %120 : vector<8x32xf32>
    %122 = arith.mulf %121, %121 : vector<8x32xf32>
    %cst_49 = arith.constant dense<0.000000e+00> : vector<8xf32>
    %123 = vector.multi_reduction <add>, %122, %cst_49 [1] : vector<8x32xf32> to vector<8xf32>
    %124 = vector.shape_cast %123 : vector<8xf32> to vector<8x1xf32>
    %cst_50 = arith.constant 3.200000e+01 : f32
    %125 = vector.broadcast %cst_50 : f32 to vector<8x1xf32>
    %126 = arith.divf %124, %125 : vector<8x1xf32>
    %127 = vector.broadcast %119 : vector<8x1xf32> to vector<8x32xf32>
    %128 = arith.subf %115, %127 : vector<8x32xf32>
    %cst_51 = arith.constant 9.99999997E-7 : f32
    %129 = vector.broadcast %cst_51 : f32 to vector<8x1xf32>
    %130 = arith.addf %126, %129 : vector<8x1xf32>
    %131 = math.rsqrt %130 : vector<8x1xf32>
    %132 = vector.broadcast %131 : vector<8x1xf32> to vector<8x32xf32>
    %133 = arith.mulf %128, %132 : vector<8x32xf32>
    %c0_52 = arith.constant 0 : index
    %c0_53 = arith.constant 0 : index
    %134 = vector.load %arg9[%c0_52, %c0_53] : memref<1x32xf32, #tpu.memory_space<vmem>>, vector<1x32xf32>
    %135 = vector.broadcast %134 : vector<1x32xf32> to vector<8x32xf32>
    %136 = arith.mulf %133, %135 : vector<8x32xf32>
    %c0_54 = arith.constant 0 : index
    %c0_55 = arith.constant 0 : index
    %137 = vector.load %arg10[%c0_54, %c0_55] : memref<1x32xf32, #tpu.memory_space<vmem>>, vector<1x32xf32>
    %138 = vector.broadcast %137 : vector<1x32xf32> to vector<8x32xf32>
    %139 = arith.addf %136, %138 : vector<8x32xf32>
    %140 = arith.truncf %139 : vector<8x32xf32> to vector<8x32xbf16>
    %c0_56 = arith.constant 0 : index
    %c0_57 = arith.constant 0 : index
    %141 = vector.load %arg11[%c0_56, %c0_57] : memref<32x32xbf16, #tpu.memory_space<vmem>>, vector<32x32xbf16>
    %cst_58 = arith.constant dense<0.000000e+00> : vector<8x32xf32>
    %142 = tpu.matmul %140, %141, %cst_58 {dimension_numbers = #tpu.dot_dimension_numbers<[1], [0], [0], [1], [0, 0, 1, 1], [], []>} : vector<8x32xbf16>, vector<32x32xbf16>, vector<8x32xf32> -> vector<8x32xf32>
    %c0_59 = arith.constant 0 : index
    %c0_60 = arith.constant 0 : index
    %143 = vector.load %arg12[%c0_59, %c0_60] : memref<1x32xf32, #tpu.memory_space<vmem>>, vector<1x32xf32>
    %144 = vector.broadcast %143 : vector<1x32xf32> to vector<8x32xf32>
    %145 = arith.addf %142, %144 : vector<8x32xf32>
    %c0_61 = arith.constant 0 : index
    %c0_62 = arith.constant 0 : index
    %146 = vector.load %arg13[%c0_61, %c0_62] : memref<32x64xbf16, #tpu.memory_space<vmem>>, vector<32x64xbf16>
    %cst_63 = arith.constant dense<0.000000e+00> : vector<16x64xf32>
    %147 = tpu.matmul %3, %146, %cst_63 {dimension_numbers = #tpu.dot_dimension_numbers<[1], [0], [0], [1], [0, 0, 1, 1], [], []>} : vector<16x32xbf16>, vector<32x64xbf16>, vector<16x64xf32> -> vector<16x64xf32>
    %c0_64 = arith.constant 0 : index
    %c0_65 = arith.constant 0 : index
    %148 = vector.load %arg14[%c0_64, %c0_65] : memref<1x64xf32, #tpu.memory_space<vmem>>, vector<1x64xf32>
    %149 = vector.broadcast %148 : vector<1x64xf32> to vector<16x64xf32>
    %150 = arith.addf %147, %149 : vector<16x64xf32>
    %151 = vector.extract_strided_slice %150 {offsets = [0, 0], sizes = [16, 32], strides = [1, 1]} : vector<16x64xf32> to vector<16x32xf32>
    %152 = vector.extract_strided_slice %150 {offsets = [0, 32], sizes = [16, 32], strides = [1, 1]} : vector<16x64xf32> to vector<16x32xf32>
    %cst_66 = arith.constant 0.353553385 : f32
    %153 = vector.broadcast %cst_66 : f32 to vector<8x32xf32>
    %154 = arith.mulf %145, %153 : vector<8x32xf32>
    %155 = arith.truncf %154 : vector<8x32xf32> to vector<8x32xbf16>
    %156 = vector.shape_cast %155 : vector<8x32xbf16> to vector<1x8x32xbf16>
    %157 = arith.truncf %151 : vector<16x32xf32> to vector<16x32xbf16>
    %158 = vector.shape_cast %157 : vector<16x32xbf16> to vector<1x16x32xbf16>
    %159 = arith.truncf %152 : vector<16x32xf32> to vector<16x32xbf16>
    %160 = vector.shape_cast %159 : vector<16x32xbf16> to vector<1x16x32xbf16>
    %c0_67 = arith.constant 0 : index
    %c0_68 = arith.constant 0 : index
    %c0_69 = arith.constant 0 : index
    %161 = vector.load %arg4[%c0_67, %c0_68, %c0_69] : memref<1x8x16xbf16, #tpu.memory_space<vmem>>, vector<1x8x16xbf16>
    %162 = arith.extf %161 : vector<1x8x16xbf16> to vector<1x8x16xf32>
    %163 = vector.extract_strided_slice %156 {offsets = [0, 0, 0], sizes = [1, 8, 8], strides = [1, 1, 1]} : vector<1x8x32xbf16> to vector<1x8x8xbf16>
    %164 = vector.extract_strided_slice %158 {offsets = [0, 0, 0], sizes = [1, 16, 8], strides = [1, 1, 1]} : vector<1x16x32xbf16> to vector<1x16x8xbf16>
    "tpu.trace_start"() <{level = 10 : i32, message = "bqd,bkd->bqk"}> : () -> ()
    %cst_70 = arith.constant dense<0.000000e+00> : vector<1x8x16xf32>
    %165 = tpu.matmul %163, %164, %cst_70 {dimension_numbers = #tpu.dot_dimension_numbers<[2], [2], [1], [1], [0, 0, 0, 1, 1, 1], [0], [0]>} : vector<1x8x8xbf16>, vector<1x16x8xbf16>, vector<1x8x16xf32> -> vector<1x8x16xf32>
    "tpu.trace_stop"() : () -> ()
    %166 = arith.addf %165, %162 : vector<1x8x16xf32>
    %cst_71 = arith.constant dense<0xFF800000> : vector<1x8xf32>
    %167 = vector.multi_reduction <maximumf>, %166, %cst_71 [2] : vector<1x8x16xf32> to vector<1x8xf32>
    %168 = vector.shape_cast %167 : vector<1x8xf32> to vector<1x8x1xf32>
    %169 = vector.broadcast %168 : vector<1x8x1xf32> to vector<1x8x16xf32>
    %170 = arith.subf %166, %169 : vector<1x8x16xf32>
    %171 = math.exp %170 : vector<1x8x16xf32>
    %cst_72 = arith.constant dense<0.000000e+00> : vector<1x8xf32>
    %172 = vector.multi_reduction <add>, %171, %cst_72 [2] : vector<1x8x16xf32> to vector<1x8xf32>
    %173 = vector.shape_cast %172 : vector<1x8xf32> to vector<1x8x1xf32>
    %174 = tpu.reciprocal %173 {approx = true} : vector<1x8x1xf32> -> vector<1x8x1xf32>
    %175 = vector.broadcast %174 : vector<1x8x1xf32> to vector<1x8x16xf32>
    %176 = arith.mulf %171, %175 : vector<1x8x16xf32>
    %177 = arith.truncf %176 : vector<1x8x16xf32> to vector<1x8x16xbf16>
    %c0_73 = arith.constant 0 : index
    %c0_74 = arith.constant 0 : index
    %c0_75 = arith.constant 0 : index
    %c0_76 = arith.constant 0 : index
    %178 = vector.load %arg27[%c0_73, %c0_74, %c0_75, %c0_76] : memref<1x4x8x16xbf16, #tpu.memory_space<vmem>>, vector<1x1x8x16xbf16>
    %179 = vector.shape_cast %178 : vector<1x1x8x16xbf16> to vector<1x8x16xbf16>
    %180 = vector.shape_cast %177 : vector<1x8x16xbf16> to vector<1x1x8x16xbf16>
    tpu.vector_store %arg27[%c0_73, %c0_74, %c0_75, %c0_76], %180 {strides = array<i32>} : memref<1x4x8x16xbf16, #tpu.memory_space<vmem>>, vector<1x1x8x16xbf16>,
    %181 = arith.truncf %176 : vector<1x8x16xf32> to vector<1x8x16xbf16>
    %182 = vector.extract_strided_slice %160 {offsets = [0, 0, 0], sizes = [1, 16, 8], strides = [1, 1, 1]} : vector<1x16x32xbf16> to vector<1x16x8xbf16>
    "tpu.trace_start"() <{level = 10 : i32, message = "bqk,bkd->bqd"}> : () -> ()
    %cst_77 = arith.constant dense<0.000000e+00> : vector<1x8x8xf32>
    %183 = tpu.matmul %181, %182, %cst_77 {dimension_numbers = #tpu.dot_dimension_numbers<[2], [1], [1], [2], [0, 0, 0, 1, 1, 2], [0], [0]>} : vector<1x8x16xbf16>, vector<1x16x8xbf16>, vector<1x8x8xf32> -> vector<1x8x8xf32>
    "tpu.trace_stop"() : () -> ()
    %184 = vector.extract_strided_slice %156 {offsets = [0, 0, 8], sizes = [1, 8, 8], strides = [1, 1, 1]} : vector<1x8x32xbf16> to vector<1x8x8xbf16>
    %185 = vector.extract_strided_slice %158 {offsets = [0, 0, 8], sizes = [1, 16, 8], strides = [1, 1, 1]} : vector<1x16x32xbf16> to vector<1x16x8xbf16>
    "tpu.trace_start"() <{level = 10 : i32, message = "bqd,bkd->bqk"}> : () -> ()
    %cst_78 = arith.constant dense<0.000000e+00> : vector<1x8x16xf32>
    %186 = tpu.matmul %184, %185, %cst_78 {dimension_numbers = #tpu.dot_dimension_numbers<[2], [2], [1], [1], [0, 0, 0, 1, 1, 1], [0], [0]>} : vector<1x8x8xbf16>, vector<1x16x8xbf16>, vector<1x8x16xf32> -> vector<1x8x16xf32>
    "tpu.trace_stop"() : () -> ()
    %187 = arith.addf %186, %162 : vector<1x8x16xf32>
    %cst_79 = arith.constant dense<0xFF800000> : vector<1x8xf32>
    %188 = vector.multi_reduction <maximumf>, %187, %cst_79 [2] : vector<1x8x16xf32> to vector<1x8xf32>
    %189 = vector.shape_cast %188 : vector<1x8xf32> to vector<1x8x1xf32>
    %190 = vector.broadcast %189 : vector<1x8x1xf32> to vector<1x8x16xf32>
    %191 = arith.subf %187, %190 : vector<1x8x16xf32>
    %192 = math.exp %191 : vector<1x8x16xf32>
    %cst_80 = arith.constant dense<0.000000e+00> : vector<1x8xf32>
    %193 = vector.multi_reduction <add>, %192, %cst_80 [2] : vector<1x8x16xf32> to vector<1x8xf32>
    %194 = vector.shape_cast %193 : vector<1x8xf32> to vector<1x8x1xf32>
    %195 = tpu.reciprocal %194 {approx = true} : vector<1x8x1xf32> -> vector<1x8x1xf32>
    %196 = vector.broadcast %195 : vector<1x8x1xf32> to vector<1x8x16xf32>
    %197 = arith.mulf %192, %196 : vector<1x8x16xf32>
    %198 = arith.truncf %197 : vector<1x8x16xf32> to vector<1x8x16xbf16>
    %c0_81 = arith.constant 0 : index
    %c1_82 = arith.constant 1 : index
    %c0_83 = arith.constant 0 : index
    %c0_84 = arith.constant 0 : index
    %199 = vector.load %arg27[%c0_81, %c1_82, %c0_83, %c0_84] : memref<1x4x8x16xbf16, #tpu.memory_space<vmem>>, vector<1x1x8x16xbf16>
    %200 = vector.shape_cast %199 : vector<1x1x8x16xbf16> to vector<1x8x16xbf16>
    %201 = vector.shape_cast %198 : vector<1x8x16xbf16> to vector<1x1x8x16xbf16>
    tpu.vector_store %arg27[%c0_81, %c1_82, %c0_83, %c0_84], %201 {strides = array<i32>} : memref<1x4x8x16xbf16, #tpu.memory_space<vmem>>, vector<1x1x8x16xbf16>,
    %202 = arith.truncf %197 : vector<1x8x16xf32> to vector<1x8x16xbf16>
    %203 = vector.extract_strided_slice %160 {offsets = [0, 0, 8], sizes = [1, 16, 8], strides = [1, 1, 1]} : vector<1x16x32xbf16> to vector<1x16x8xbf16>
    "tpu.trace_start"() <{level = 10 : i32, message = "bqk,bkd->bqd"}> : () -> ()
    %cst_85 = arith.constant dense<0.000000e+00> : vector<1x8x8xf32>
    %204 = tpu.matmul %202, %203, %cst_85 {dimension_numbers = #tpu.dot_dimension_numbers<[2], [1], [1], [2], [0, 0, 0, 1, 1, 2], [0], [0]>} : vector<1x8x16xbf16>, vector<1x16x8xbf16>, vector<1x8x8xf32> -> vector<1x8x8xf32>
    "tpu.trace_stop"() : () -> ()
    %205 = vector.extract_strided_slice %156 {offsets = [0, 0, 16], sizes = [1, 8, 8], strides = [1, 1, 1]} : vector<1x8x32xbf16> to vector<1x8x8xbf16>
    %206 = vector.extract_strided_slice %158 {offsets = [0, 0, 16], sizes = [1, 16, 8], strides = [1, 1, 1]} : vector<1x16x32xbf16> to vector<1x16x8xbf16>
    "tpu.trace_start"() <{level = 10 : i32, message = "bqd,bkd->bqk"}> : () -> ()
    %cst_86 = arith.constant dense<0.000000e+00> : vector<1x8x16xf32>
    %207 = tpu.matmul %205, %206, %cst_86 {dimension_numbers = #tpu.dot_dimension_numbers<[2], [2], [1], [1], [0, 0, 0, 1, 1, 1], [0], [0]>} : vector<1x8x8xbf16>, vector<1x16x8xbf16>, vector<1x8x16xf32> -> vector<1x8x16xf32>
    "tpu.trace_stop"() : () -> ()
    %208 = arith.addf %207, %162 : vector<1x8x16xf32>
    %cst_87 = arith.constant dense<0xFF800000> : vector<1x8xf32>
    %209 = vector.multi_reduction <maximumf>, %208, %cst_87 [2] : vector<1x8x16xf32> to vector<1x8xf32>
    %210 = vector.shape_cast %209 : vector<1x8xf32> to vector<1x8x1xf32>
    %211 = vector.broadcast %210 : vector<1x8x1xf32> to vector<1x8x16xf32>
    %212 = arith.subf %208, %211 : vector<1x8x16xf32>
    %213 = math.exp %212 : vector<1x8x16xf32>
    %cst_88 = arith.constant dense<0.000000e+00> : vector<1x8xf32>
    %214 = vector.multi_reduction <add>, %213, %cst_88 [2] : vector<1x8x16xf32> to vector<1x8xf32>
    %215 = vector.shape_cast %214 : vector<1x8xf32> to vector<1x8x1xf32>
    %216 = tpu.reciprocal %215 {approx = true} : vector<1x8x1xf32> -> vector<1x8x1xf32>
    %217 = vector.broadcast %216 : vector<1x8x1xf32> to vector<1x8x16xf32>
    %218 = arith.mulf %213, %217 : vector<1x8x16xf32>
    %219 = arith.truncf %218 : vector<1x8x16xf32> to vector<1x8x16xbf16>
    %c0_89 = arith.constant 0 : index
    %c2_90 = arith.constant 2 : index
    %c0_91 = arith.constant 0 : index
    %c0_92 = arith.constant 0 : index
    %220 = vector.load %arg27[%c0_89, %c2_90, %c0_91, %c0_92] : memref<1x4x8x16xbf16, #tpu.memory_space<vmem>>, vector<1x1x8x16xbf16>
    %221 = vector.shape_cast %220 : vector<1x1x8x16xbf16> to vector<1x8x16xbf16>
    %222 = vector.shape_cast %219 : vector<1x8x16xbf16> to vector<1x1x8x16xbf16>
    tpu.vector_store %arg27[%c0_89, %c2_90, %c0_91, %c0_92], %222 {strides = array<i32>} : memref<1x4x8x16xbf16, #tpu.memory_space<vmem>>, vector<1x1x8x16xbf16>,
    %223 = arith.truncf %218 : vector<1x8x16xf32> to vector<1x8x16xbf16>
    %224 = vector.extract_strided_slice %160 {offsets = [0, 0, 16], sizes = [1, 16, 8], strides = [1, 1, 1]} : vector<1x16x32xbf16> to vector<1x16x8xbf16>
    "tpu.trace_start"() <{level = 10 : i32, message = "bqk,bkd->bqd"}> : () -> ()
    %cst_93 = arith.constant dense<0.000000e+00> : vector<1x8x8xf32>
    %225 = tpu.matmul %223, %224, %cst_93 {dimension_numbers = #tpu.dot_dimension_numbers<[2], [1], [1], [2], [0, 0, 0, 1, 1, 2], [0], [0]>} : vector<1x8x16xbf16>, vector<1x16x8xbf16>, vector<1x8x8xf32> -> vector<1x8x8xf32>
    "tpu.trace_stop"() : () -> ()
    %226 = vector.extract_strided_slice %156 {offsets = [0, 0, 24], sizes = [1, 8, 8], strides = [1, 1, 1]} : vector<1x8x32xbf16> to vector<1x8x8xbf16>
    %227 = vector.extract_strided_slice %158 {offsets = [0, 0, 24], sizes = [1, 16, 8], strides = [1, 1, 1]} : vector<1x16x32xbf16> to vector<1x16x8xbf16>
    "tpu.trace_start"() <{level = 10 : i32, message = "bqd,bkd->bqk"}> : () -> ()
    %cst_94 = arith.constant dense<0.000000e+00> : vector<1x8x16xf32>
    %228 = tpu.matmul %226, %227, %cst_94 {dimension_numbers = #tpu.dot_dimension_numbers<[2], [2], [1], [1], [0, 0, 0, 1, 1, 1], [0], [0]>} : vector<1x8x8xbf16>, vector<1x16x8xbf16>, vector<1x8x16xf32> -> vector<1x8x16xf32>
    "tpu.trace_stop"() : () -> ()
    %229 = arith.addf %228, %162 : vector<1x8x16xf32>
    %cst_95 = arith.constant dense<0xFF800000> : vector<1x8xf32>
    %230 = vector.multi_reduction <maximumf>, %229, %cst_95 [2] : vector<1x8x16xf32> to vector<1x8xf32>
    %231 = vector.shape_cast %230 : vector<1x8xf32> to vector<1x8x1xf32>
    %232 = vector.broadcast %231 : vector<1x8x1xf32> to vector<1x8x16xf32>
    %233 = arith.subf %229, %232 : vector<1x8x16xf32>
    %234 = math.exp %233 : vector<1x8x16xf32>
    %cst_96 = arith.constant dense<0.000000e+00> : vector<1x8xf32>
    %235 = vector.multi_reduction <add>, %234, %cst_96 [2] : vector<1x8x16xf32> to vector<1x8xf32>
    %236 = vector.shape_cast %235 : vector<1x8xf32> to vector<1x8x1xf32>
    %237 = tpu.reciprocal %236 {approx = true} : vector<1x8x1xf32> -> vector<1x8x1xf32>
    %238 = vector.broadcast %237 : vector<1x8x1xf32> to vector<1x8x16xf32>
    %239 = arith.mulf %234, %238 : vector<1x8x16xf32>
    %240 = arith.truncf %239 : vector<1x8x16xf32> to vector<1x8x16xbf16>
    %c0_97 = arith.constant 0 : index
    %c3_98 = arith.constant 3 : index
    %c0_99 = arith.constant 0 : index
    %c0_100 = arith.constant 0 : index
    %241 = vector.load %arg27[%c0_97, %c3_98, %c0_99, %c0_100] : memref<1x4x8x16xbf16, #tpu.memory_space<vmem>>, vector<1x1x8x16xbf16>
    %242 = vector.shape_cast %241 : vector<1x1x8x16xbf16> to vector<1x8x16xbf16>
    %243 = vector.shape_cast %240 : vector<1x8x16xbf16> to vector<1x1x8x16xbf16>
    tpu.vector_store %arg27[%c0_97, %c3_98, %c0_99, %c0_100], %243 {strides = array<i32>} : memref<1x4x8x16xbf16, #tpu.memory_space<vmem>>, vector<1x1x8x16xbf16>,
    %244 = arith.truncf %239 : vector<1x8x16xf32> to vector<1x8x16xbf16>
    %245 = vector.extract_strided_slice %160 {offsets = [0, 0, 24], sizes = [1, 16, 8], strides = [1, 1, 1]} : vector<1x16x32xbf16> to vector<1x16x8xbf16>
    "tpu.trace_start"() <{level = 10 : i32, message = "bqk,bkd->bqd"}> : () -> ()
    %cst_101 = arith.constant dense<0.000000e+00> : vector<1x8x8xf32>
    %246 = tpu.matmul %244, %245, %cst_101 {dimension_numbers = #tpu.dot_dimension_numbers<[2], [1], [1], [2], [0, 0, 0, 1, 1, 2], [0], [0]>} : vector<1x8x16xbf16>, vector<1x16x8xbf16>, vector<1x8x8xf32> -> vector<1x8x8xf32>
    "tpu.trace_stop"() : () -> ()
    %247 = tpu.concatenate %183, %204, %225, %246 in 2 : vector<1x8x8xf32>, vector<1x8x8xf32>, vector<1x8x8xf32>, vector<1x8x8xf32> -> vector<1x8x32xf32>
    %248 = vector.shape_cast %247 : vector<1x8x32xf32> to vector<8x32xf32>
    %249 = arith.truncf %248 : vector<8x32xf32> to vector<8x32xbf16>
    %c0_102 = arith.constant 0 : index
    %c0_103 = arith.constant 0 : index
    %250 = vector.load %arg15[%c0_102, %c0_103] : memref<32x32xbf16, #tpu.memory_space<vmem>>, vector<32x32xbf16>
    %cst_104 = arith.constant dense<0.000000e+00> : vector<8x32xf32>
    %251 = tpu.matmul %249, %250, %cst_104 {dimension_numbers = #tpu.dot_dimension_numbers<[1], [0], [0], [1], [0, 0, 1, 1], [], []>} : vector<8x32xbf16>, vector<32x32xbf16>, vector<8x32xf32> -> vector<8x32xf32>
    %c0_105 = arith.constant 0 : index
    %c0_106 = arith.constant 0 : index
    %252 = vector.load %arg16[%c0_105, %c0_106] : memref<1x32xf32, #tpu.memory_space<vmem>>, vector<1x32xf32>
    %253 = vector.broadcast %252 : vector<1x32xf32> to vector<8x32xf32>
    %254 = arith.addf %251, %253 : vector<8x32xf32>
    %255 = arith.addf %139, %254 : vector<8x32xf32>
    %cst_107 = arith.constant dense<0.000000e+00> : vector<8xf32>
    %256 = vector.multi_reduction <add>, %255, %cst_107 [1] : vector<8x32xf32> to vector<8xf32>
    %257 = vector.shape_cast %256 : vector<8xf32> to vector<8x1xf32>
    %cst_108 = arith.constant 3.200000e+01 : f32
    %258 = vector.broadcast %cst_108 : f32 to vector<8x1xf32>
    %259 = arith.divf %257, %258 : vector<8x1xf32>
    %260 = vector.broadcast %259 : vector<8x1xf32> to vector<8x32xf32>
    %261 = arith.subf %255, %260 : vector<8x32xf32>
    %262 = arith.mulf %261, %261 : vector<8x32xf32>
    %cst_109 = arith.constant dense<0.000000e+00> : vector<8xf32>
    %263 = vector.multi_reduction <add>, %262, %cst_109 [1] : vector<8x32xf32> to vector<8xf32>
    %264 = vector.shape_cast %263 : vector<8xf32> to vector<8x1xf32>
    %cst_110 = arith.constant 3.200000e+01 : f32
    %265 = vector.broadcast %cst_110 : f32 to vector<8x1xf32>
    %266 = arith.divf %264, %265 : vector<8x1xf32>
    %267 = vector.broadcast %259 : vector<8x1xf32> to vector<8x32xf32>
    %268 = arith.subf %255, %267 : vector<8x32xf32>
    %cst_111 = arith.constant 9.99999997E-7 : f32
    %269 = vector.broadcast %cst_111 : f32 to vector<8x1xf32>
    %270 = arith.addf %266, %269 : vector<8x1xf32>
    %271 = math.rsqrt %270 : vector<8x1xf32>
    %272 = vector.broadcast %271 : vector<8x1xf32> to vector<8x32xf32>
    %273 = arith.mulf %268, %272 : vector<8x32xf32>
    %c0_112 = arith.constant 0 : index
    %c0_113 = arith.constant 0 : index
    %274 = vector.load %arg17[%c0_112, %c0_113] : memref<1x32xf32, #tpu.memory_space<vmem>>, vector<1x32xf32>
    %275 = vector.broadcast %274 : vector<1x32xf32> to vector<8x32xf32>
    %276 = arith.mulf %273, %275 : vector<8x32xf32>
    %c0_114 = arith.constant 0 : index
    %c0_115 = arith.constant 0 : index
    %277 = vector.load %arg18[%c0_114, %c0_115] : memref<1x32xf32, #tpu.memory_space<vmem>>, vector<1x32xf32>
    %278 = vector.broadcast %277 : vector<1x32xf32> to vector<8x32xf32>
    %279 = arith.addf %276, %278 : vector<8x32xf32>
    %280 = arith.truncf %279 : vector<8x32xf32> to vector<8x32xbf16>
    %c0_116 = arith.constant 0 : index
    %c0_117 = arith.constant 0 : index
    %281 = vector.load %arg19[%c0_116, %c0_117] : memref<32x64xbf16, #tpu.memory_space<vmem>>, vector<32x64xbf16>
    %cst_118 = arith.constant dense<0.000000e+00> : vector<8x64xf32>
    %282 = tpu.matmul %280, %281, %cst_118 {dimension_numbers = #tpu.dot_dimension_numbers<[1], [0], [0], [1], [0, 0, 1, 1], [], []>} : vector<8x32xbf16>, vector<32x64xbf16>, vector<8x64xf32> -> vector<8x64xf32>
    %c0_119 = arith.constant 0 : index
    %c0_120 = arith.constant 0 : index
    %283 = vector.load %arg20[%c0_119, %c0_120] : memref<1x64xf32, #tpu.memory_space<vmem>>, vector<1x64xf32>
    %284 = vector.broadcast %283 : vector<1x64xf32> to vector<8x64xf32>
    %285 = arith.addf %282, %284 : vector<8x64xf32>
    %cst_121 = arith.constant 0.000000e+00 : f32
    %286 = vector.broadcast %cst_121 : f32 to vector<8x64xf32>
    %287 = arith.maximumf %285, %286 : vector<8x64xf32>
    %288 = arith.truncf %287 : vector<8x64xf32> to vector<8x64xbf16>
    %c0_122 = arith.constant 0 : index
    %c0_123 = arith.constant 0 : index
    %289 = vector.load %arg21[%c0_122, %c0_123] : memref<64x32xbf16, #tpu.memory_space<vmem>>, vector<64x32xbf16>
    %cst_124 = arith.constant dense<0.000000e+00> : vector<8x32xf32>
    %290 = tpu.matmul %288, %289, %cst_124 {dimension_numbers = #tpu.dot_dimension_numbers<[1], [0], [0], [1], [0, 0, 1, 1], [], []>} : vector<8x64xbf16>, vector<64x32xbf16>, vector<8x32xf32> -> vector<8x32xf32>
    %c0_125 = arith.constant 0 : index
    %c0_126 = arith.constant 0 : index
    %291 = vector.load %arg22[%c0_125, %c0_126] : memref<1x32xf32, #tpu.memory_space<vmem>>, vector<1x32xf32>
    %292 = vector.broadcast %291 : vector<1x32xf32> to vector<8x32xf32>
    %293 = arith.addf %290, %292 : vector<8x32xf32>
    %294 = arith.addf %293, %279 : vector<8x32xf32>
    %cst_127 = arith.constant dense<0.000000e+00> : vector<8xf32>
    %295 = vector.multi_reduction <add>, %294, %cst_127 [1] : vector<8x32xf32> to vector<8xf32>
    %296 = vector.shape_cast %295 : vector<8xf32> to vector<8x1xf32>
    %cst_128 = arith.constant 3.200000e+01 : f32
    %297 = vector.broadcast %cst_128 : f32 to vector<8x1xf32>
    %298 = arith.divf %296, %297 : vector<8x1xf32>
    %299 = vector.broadcast %298 : vector<8x1xf32> to vector<8x32xf32>
    %300 = arith.subf %294, %299 : vector<8x32xf32>
    %301 = arith.mulf %300, %300 : vector<8x32xf32>
    %cst_129 = arith.constant dense<0.000000e+00> : vector<8xf32>
    %302 = vector.multi_reduction <add>, %301, %cst_129 [1] : vector<8x32xf32> to vector<8xf32>
    %303 = vector.shape_cast %302 : vector<8xf32> to vector<8x1xf32>
    %cst_130 = arith.constant 3.200000e+01 : f32
    %304 = vector.broadcast %cst_130 : f32 to vector<8x1xf32>
    %305 = arith.divf %303, %304 : vector<8x1xf32>
    %306 = vector.broadcast %298 : vector<8x1xf32> to vector<8x32xf32>
    %307 = arith.subf %294, %306 : vector<8x32xf32>
    %cst_131 = arith.constant 9.99999997E-7 : f32
    %308 = vector.broadcast %cst_131 : f32 to vector<8x1xf32>
    %309 = arith.addf %305, %308 : vector<8x1xf32>
    %310 = math.rsqrt %309 : vector<8x1xf32>
    %311 = vector.broadcast %310 : vector<8x1xf32> to vector<8x32xf32>
    %312 = arith.mulf %307, %311 : vector<8x32xf32>
    %c0_132 = arith.constant 0 : index
    %c0_133 = arith.constant 0 : index
    %313 = vector.load %arg23[%c0_132, %c0_133] : memref<1x32xf32, #tpu.memory_space<vmem>>, vector<1x32xf32>
    %314 = vector.broadcast %313 : vector<1x32xf32> to vector<8x32xf32>
    %315 = arith.mulf %312, %314 : vector<8x32xf32>
    %c0_134 = arith.constant 0 : index
    %c0_135 = arith.constant 0 : index
    %316 = vector.load %arg24[%c0_134, %c0_135] : memref<1x32xf32, #tpu.memory_space<vmem>>, vector<1x32xf32>
    %317 = vector.broadcast %316 : vector<1x32xf32> to vector<8x32xf32>
    %318 = arith.addf %315, %317 : vector<8x32xf32>
    %319 = vector.shape_cast %318 : vector<8x32xf32> to vector<1x8x32xf32>
    %c0_136 = arith.constant 0 : index
    %c0_137 = arith.constant 0 : index
    %c0_138 = arith.constant 0 : index
    %320 = vector.load %arg25[%c0_136, %c0_137, %c0_138] : memref<1x8x32xf32, #tpu.memory_space<vmem>>, vector<1x8x32xf32>
    tpu.vector_store %arg25[%c0_136, %c0_137, %c0_138], %319 {strides = array<i32>} : memref<1x8x32xf32, #tpu.memory_space<vmem>>, vector<1x8x32xf32>,
    return
  }
  func.func @transform_0(%arg0: i32) -> (i32, i32, i32) {
    %c0_i32 = arith.constant 0 : i32
    %c0_i32_0 = arith.constant 0 : i32
    %c0_i32_1 = arith.constant 0 : i32
    return %arg0, %c0_i32, %c0_i32_0 : i32, i32, i32
  }
  func.func @transform_1(%arg0: i32) -> (i32, i32, i32) {
    %c0_i32 = arith.constant 0 : i32
    %c0_i32_0 = arith.constant 0 : i32
    %c0_i32_1 = arith.constant 0 : i32
    return %arg0, %c0_i32, %c0_i32_0 : i32, i32, i32
  }
  func.func @transform_2(%arg0: i32) -> (i32, i32, i32) {
    %c0_i32 = arith.constant 0 : i32
    %c0_i32_0 = arith.constant 0 : i32
    %c0_i32_1 = arith.constant 0 : i32
    return %arg0, %c0_i32, %c0_i32_0 : i32, i32, i32
  }
  func.func @transform_3(%arg0: i32) -> (i32, i32, i32) {
    %c0_i32 = arith.constant 0 : i32
    %c0_i32_0 = arith.constant 0 : i32
    %c0_i32_1 = arith.constant 0 : i32
    return %arg0, %c0_i32, %c0_i32_0 : i32, i32, i32
  }
  func.func @transform_4(%arg0: i32) -> (i32, i32) {
    %c0_i32 = arith.constant 0 : i32
    %c0_i32_0 = arith.constant 0 : i32
    %c0_i32_1 = arith.constant 0 : i32
    return %c0_i32, %c0_i32_0 : i32, i32
  }
  func.func @transform_5(%arg0: i32) -> (i32, i32) {
    %c0_i32 = arith.constant 0 : i32
    %c0_i32_0 = arith.constant 0 : i32
    %c0_i32_1 = arith.constant 0 : i32
    return %c0_i32, %c0_i32_0 : i32, i32
  }
  func.func @transform_6(%arg0: i32) -> (i32, i32) {
    %c0_i32 = arith.constant 0 : i32
    %c0_i32_0 = arith.constant 0 : i32
    %c0_i32_1 = arith.constant 0 : i32
    return %c0_i32, %c0_i32_0 : i32, i32
  }
  func.func @transform_7(%arg0: i32) -> (i32, i32) {
    %c0_i32 = arith.constant 0 : i32
    %c0_i32_0 = arith.constant 0 : i32
    %c0_i32_1 = arith.constant 0 : i32
    return %c0_i32, %c0_i32_0 : i32, i32
  }
  func.func @transform_8(%arg0: i32) -> (i32, i32) {
    %c0_i32 = arith.constant 0 : i32
    %c0_i32_0 = arith.constant 0 : i32
    %c0_i32_1 = arith.constant 0 : i32
    return %c0_i32, %c0_i32_0 : i32, i32
  }
  func.func @transform_9(%arg0: i32) -> (i32, i32) {
    %c0_i32 = arith.constant 0 : i32
    %c0_i32_0 = arith.constant 0 : i32
    %c0_i32_1 = arith.constant 0 : i32
    return %c0_i32, %c0_i32_0 : i32, i32
  }
  func.func @transform_10(%arg0: i32) -> (i32, i32) {
    %c0_i32 = arith.constant 0 : i32
    %c0_i32_0 = arith.constant 0 : i32
    %c0_i32_1 = arith.constant 0 : i32
    return %c0_i32, %c0_i32_0 : i32, i32
  }
  func.func @transform_11(%arg0: i32) -> (i32, i32) {
    %c0_i32 = arith.constant 0 : i32
    %c0_i32_0 = arith.constant 0 : i32
    %c0_i32_1 = arith.constant 0 : i32
    return %c0_i32, %c0_i32_0 : i32, i32
  }
  func.func @transform_12(%arg0: i32) -> (i32, i32) {
    %c0_i32 = arith.constant 0 : i32
    %c0_i32_0 = arith.constant 0 : i32
    %c0_i32_1 = arith.constant 0 : i32
    return %c0_i32, %c0_i32_0 : i32, i32
  }
  func.func @transform_13(%arg0: i32) -> (i32, i32) {
    %c0_i32 = arith.constant 0 : i32
    %c0_i32_0 = arith.constant 0 : i32
    %c0_i32_1 = arith.constant 0 : i32
    return %c0_i32, %c0_i32_0 : i32, i32
  }
  func.func @transform_14(%arg0: i32) -> (i32, i32) {
    %c0_i32 = arith.constant 0 : i32
    %c0_i32_0 = arith.constant 0 : i32
    %c0_i32_1 = arith.constant 0 : i32
    return %c0_i32, %c0_i32_0 : i32, i32
  }
  func.func @transform_15(%arg0: i32) -> (i32, i32) {
    %c0_i32 = arith.constant 0 : i32
    %c0_i32_0 = arith.constant 0 : i32
    %c0_i32_1 = arith.constant 0 : i32
    return %c0_i32, %c0_i32_0 : i32, i32
  }
  func.func @transform_16(%arg0: i32) -> (i32, i32) {
    %c0_i32 = arith.constant 0 : i32
    %c0_i32_0 = arith.constant 0 : i32
    %c0_i32_1 = arith.constant 0 : i32
    return %c0_i32, %c0_i32_0 : i32, i32
  }
  func.func @transform_17(%arg0: i32) -> (i32, i32) {
    %c0_i32 = arith.constant 0 : i32
    %c0_i32_0 = arith.constant 0 : i32
    %c0_i32_1 = arith.constant 0 : i32
    return %c0_i32, %c0_i32_0 : i32, i32
  }
  func.func @transform_18(%arg0: i32) -> (i32, i32) {
    %c0_i32 = arith.constant 0 : i32
    %c0_i32_0 = arith.constant 0 : i32
    %c0_i32_1 = arith.constant 0 : i32
    return %c0_i32, %c0_i32_0 : i32, i32
  }
  func.func @transform_19(%arg0: i32) -> (i32, i32) {
    %c0_i32 = arith.constant 0 : i32
    %c0_i32_0 = arith.constant 0 : i32
    %c0_i32_1 = arith.constant 0 : i32
    return %c0_i32, %c0_i32_0 : i32, i32
  }
  func.func @transform_20(%arg0: i32) -> (i32, i32) {
    %c0_i32 = arith.constant 0 : i32
    %c0_i32_0 = arith.constant 0 : i32
    %c0_i32_1 = arith.constant 0 : i32
    return %c0_i32, %c0_i32_0 : i32, i32
  }
  func.func @transform_21(%arg0: i32) -> (i32, i32) {
    %c0_i32 = arith.constant 0 : i32
    %c0_i32_0 = arith.constant 0 : i32
    %c0_i32_1 = arith.constant 0 : i32
    return %c0_i32, %c0_i32_0 : i32, i32
  }
  func.func @transform_22(%arg0: i32) -> (i32, i32) {
    %c0_i32 = arith.constant 0 : i32
    %c0_i32_0 = arith.constant 0 : i32
    %c0_i32_1 = arith.constant 0 : i32
    return %c0_i32, %c0_i32_0 : i32, i32
  }
  func.func @transform_23(%arg0: i32) -> (i32, i32) {
    %c0_i32 = arith.constant 0 : i32
    %c0_i32_0 = arith.constant 0 : i32
    %c0_i32_1 = arith.constant 0 : i32
    return %c0_i32, %c0_i32_0 : i32, i32
  }
  func.func @transform_24(%arg0: i32) -> (i32, i32, i32) {
    %c0_i32 = arith.constant 0 : i32
    %c0_i32_0 = arith.constant 0 : i32
    %c0_i32_1 = arith.constant 0 : i32
    return %arg0, %c0_i32, %c0_i32_0 : i32, i32, i32
  }
  func.func @transform_25(%arg0: i32) -> (i32, i32, i32, i32) {
    %c0_i32 = arith.constant 0 : i32
    %c0_i32_0 = arith.constant 0 : i32
    %c0_i32_1 = arith.constant 0 : i32
    %c0_i32_2 = arith.constant 0 : i32
    return %arg0, %c0_i32, %c0_i32_0, %c0_i32_1 : i32, i32, i32, i32
  }
  func.func @transform_26(%arg0: i32) -> (i32, i32, i32, i32) {
    %c0_i32 = arith.constant 0 : i32
    %c0_i32_0 = arith.constant 0 : i32
    %c0_i32_1 = arith.constant 0 : i32
    %c0_i32_2 = arith.constant 0 : i32
    return %arg0, %c0_i32, %c0_i32_0, %c0_i32_1 : i32, i32, i32, i32
  }
}

</mosaic_0001>

<bundles_post_ra>
// kernel: tpu_custom_call.1
= control target key start
LH: loop header
LB: loop body
LE: loop exit
PB: predicated region body
PF: predicated region fallthrough
CT: control target
= control target key end

     0   :  { %s4031_s0 = inlined_call_operand.hbm [shape: bf16[2,8,32], index: 0, kind: input, shape index: {}]   ;;  %s4032_s1 = inlined_call_operand.vmem [shape: bf16[2,16,32], index: 1, kind: input, shape index: {}]   ;;  %s4033_s2 = inlined_call_operand.hbm [shape: bf16[2,8,8], index: 2, kind: input, shape index: {}]   ;;  %s4034_s3 = inlined_call_operand.hbm [shape: bf16[2,8,16], index: 3, kind: input, shape index: {}]   ;;  %s4035_s4 = inlined_call_operand.vmem [shape: bf16[32,96], index: 4, kind: input, shape index: {}]   ;;  %s4036_s5 = inlined_call_operand.vmem [shape: f32[1,96], index: 5, kind: input, shape index: {}]   ;;  %s4037_s6 = inlined_call_operand.vmem [shape: bf16[32,32], index: 6, kind: input, shape index: {}]   ;;  %s4038_s7 = inlined_call_operand.vmem [shape: f32[1,32], index: 7, kind: input, shape index: {}]   ;;  %s4039_s8 = inlined_call_operand.vmem [shape: f32[1,32], index: 8, kind: input, shape index: {}]   ;;  %s4040_s9 = inlined_call_operand.hbm [shape: f32[1,32], index: 9, kind: input, shape index: {}]   ;;  %s4041_s10 = inlined_call_operand.hbm [shape: bf16[32,32], index: 10, kind: input, shape index: {}]   ;;  %s4042_s11 = inlined_call_operand.hbm [shape: f32[1,32], index: 11, kind: input, shape index: {}]   ;;  %s4043_s12 = inlined_call_operand.hbm [shape: bf16[32,64], index: 12, kind: input, shape index: {}]   ;;  %s4044_s13 = inlined_call_operand.hbm [shape: f32[1,64], index: 13, kind: input, shape index: {}]   ;;  %s4045_s14 = inlined_call_operand.hbm [shape: bf16[32,32], index: 14, kind: input, shape index: {}]   ;;  %s4046_s15 = inlined_call_operand.hbm [shape: f32[1,32], index: 15, kind: input, shape index: {}]   ;;  %s4047_s16 = inlined_call_operand.hbm [shape: f32[1,32], index: 16, kind: input, shape index: {}]   ;;  %s4048_s17 = inlined_call_operand.hbm [shape: f32[1,32], index: 17, kind: input, shape index: {}]   ;;  %s4049_s18 = inlined_call_operand.hbm [shape: bf16[32,64], index: 18, kind: input, shape index: {}]   ;;  %s4050_s19 = inlined_call_operand.hbm [shape: f32[1,64], index: 19, kind: input, shape index: {}]   ;;  %s4051_s20 = inlined_call_operand.vmem [shape: bf16[64,32], index: 20, kind: input, shape index: {}]   ;;  %s4052_s21 = inlined_call_operand.vmem [shape: f32[1,32], index: 21, kind: input, shape index: {}]   ;;  %s4053_s22 = inlined_call_operand.vmem [shape: f32[1,32], index: 22, kind: input, shape index: {}]   ;;  %s4054_s23 = inlined_call_operand.vmem [shape: f32[1,32], index: 23, kind: input, shape index: {}]   ;;  %s4055_s24 = inlined_call_operand.hbm [shape: f32[2,8,32], index: 24, kind: output, shape index: {0}]   ;;  %s4056_s25 = inlined_call_operand.hbm [shape: bf16[2,4,8,8], index: 25, kind: output, shape index: {1}]   ;;  %s4057_s26 = inlined_call_operand.hbm [shape: bf16[2,4,8,16], index: 26, kind: output, shape index: {2}]  }
   0x1   :  { %4082 = sst [smem:[#allocation45_spill]] %s4031_s0 }
   0x2   :  { %4083 = sst [smem:[#allocation46_spill]] %s4032_s1 }
   0x3   :  { %4084 = sst [smem:[#allocation47_spill]] %s4033_s2 }
   0x4   :  { %4085 = sst [smem:[#allocation48_spill]] %s4034_s3 }
   0x5   :  { %4086 = sst [smem:[#allocation49_spill]] %s4035_s4 }
   0x6   :  { %4087 = sst [smem:[#allocation50_spill]] %s4036_s5 }
   0x7   :  { %4088 = sst [smem:[#allocation51_spill]] %s4037_s6 }
   0x8   :  { %4089 = sst [smem:[#allocation52_spill]] %s4038_s7 }
   0x9   :  { %4090 = sst [smem:[#allocation53_spill]] %s4039_s8 }
   0xa   :  { %4091 = sst [smem:[#allocation54_spill]] %s4040_s9 }
   0xb   :  { %4092 = sst [smem:[#allocation55_spill]] %s4041_s10 }
   0xc   :  { %4093 = sst [smem:[#allocation56_spill]] %s4042_s11 }
   0xd   :  { %4094 = sst [smem:[#allocation57_spill]] %s4043_s12 }
   0xe   :  { %4095 = sst [smem:[#allocation58_spill]] %s4044_s13 }
   0xf   :  { %4096 = sst [smem:[#allocation59_spill]] %s4045_s14 }
  0x10   :  { %4097 = sst [smem:[#allocation60_spill]] %s4046_s15 }
  0x11   :  { %4098 = sst [smem:[#allocation61_spill]] %s4048_s17 }
  0x12   :  { %4099 = sst [smem:[#allocation62_spill]] %s4052_s21 }
  0x13   :  { %4100 = sst [smem:[#allocation63_spill]] %s4053_s22 }
  0x14   :  { %4101 = sst [smem:[#allocation64_spill]] %s4054_s23 }
  0x15   :  { %4102 = sst [smem:[#allocation65_spill]] %s4055_s24 }
  0x16   :  { %4103 = sst [smem:[#allocation66_spill]] %s4056_s25 }
  0x17   :  { %4104 = sst [smem:[#allocation67_spill]] %s4057_s26 }
  0x18   :  { %32 = vsyncpa [#allocation3], 0 }
  0x19   :  { %34 = vsyncpa [#allocation3 + $0x1], 0 }
  0x1a   :  { %35 = vsyncpa [#allocation6], 0 }
  0x1b   :  { %37 = vsyncpa [#allocation6 + $0x1], 0 }
  0x1c   :  { %38 = vsyncpa [#allocation9], 0 }
  0x1d   :  { %39 = vsyncpa [#allocation12], 0 }
  0x1e   :  { %40 = vsyncpa [#allocation15], 0 }
  0x1f   :  { %41 = vsyncpa [#allocation18], 0 }
  0x20   :  { %42 = vsyncpa [#allocation21], 0 }
  0x21   :  { %43 = vsyncpa [#allocation24], 0 }
  0x22   :  { %44 = vsyncpa [#allocation4], 0 }
  0x23   :  { %46 = vsyncpa [#allocation4 + $0x1], 0 }
  0x24   :  { %47 = vsyncpa [#allocation27], 0 }
  0x25   :  { %49 = vsyncpa [#allocation27 + $0x1], 0  ;;  %s3501_s27 = smov 0   ;;  %s3503_s3 = smov 0  }
  0x26   :  { %s3505_s7 = smov 0   ;;  %s3507_s28 = smov 0  }
  0x27 LB: > { %4105 = sst [smem:[#allocation39_spill]] %s3323_s27  ;;  %s3525_s9 = sadd.s32 4294967295, %s3335_s28   ;;  %s3335_s28 = sphi %s3507_s28, %s4164_s28   ;;  %s3331_s7 = sphi %s3505_s7, %s4168_s7   ;;  %s3327_s3 = sphi %s3503_s3, %s4167_s3   ;;  %s3323_s27 = sphi %s3501_s27, %s4166_s27  }
  0x28   : > { %4106 = sst [smem:[#allocation40_spill]] %s3335_s28  ;;  %p2347_p0 = scmp.ge.s32.totalorder %s3335_s28, 1 }
  0x29   : > { %s4107_s29 = sld [smem:[#allocation54_spill]]  ;;  %p4076_p1 = scmp.eq.s32.totalorder %s3525_s9, 0 }
  0x2a   : > { %p662_p2 = scmp.lt.s32.totalorder %s3335_s28, 3  ;;  %s3337_s2 = smov [#allocation8]  }
  0x2b   : > { %s691_s5 = sshll.u32 %s3337_s2, 4  ;;  %s4109_s11 = sld [smem:[#allocation56_spill]]  ;;  %s692_s5 = int_to_ptr.vmem [resolvable:$true] %s691_s5 }
  0x2c   : > { %p3530_p3 = pnand %p2347_p0, %p662_p2  ;;  %s3338_s4 = smov [#allocation11]  }
  0x2d   : > { %s4111_s13 = sld [smem:[#allocation58_spill]]  ;;  %s3339_s22 = smov [#allocation14]  }
  0x2e   : > { %p2569_p5 = pneg %p3530_p3  ;;  %s4112_s15 = sld [smem:[#allocation60_spill]] }
  0x2f   : > { %s689_s0 = sshll.u32 %s4107_s29, 4  ;;  %s717_s29 = sshll.u32 %s3338_s4, 4  ;;  %s690_s0 = int_to_ptr.hbm [resolvable:$true] %s689_s0  ;;  %s718_s29 = int_to_ptr.vmem [resolvable:$true] %s717_s29 }
  0x30   : > { %p3542_p6 = pnand %p2569_p5, %p4076_p1  ;;  %s743_s4 = sshll.u32 %s3339_s22, 4  ;;  %s744_s4 = int_to_ptr.vmem [resolvable:$true] %s743_s4 }
  0x31   : > { %s715_s1 = sshll.u32 %s4109_s11, 4  ;;  %s3340_s23 = smov [#allocation17]   ;;  %s716_s1 = int_to_ptr.hbm [resolvable:$true] %s715_s1 }
  0x32   : > { %2572 = dma.hbm_to_vmem [thread:$0]  (!%p3542_p6), %s690_s0, 16, %s692_s5, [#allocation9]  }
  0x33   : > { %s741_s24 = sshll.u32 %s4111_s13, 4  ;;  %s769_s0 = sshll.u32 %s3340_s23, 4  ;;  %s742_s24 = int_to_ptr.hbm [resolvable:$true] %s741_s24  ;;  %s770_s0 = int_to_ptr.vmem [resolvable:$true] %s769_s0 }
  0x34   : > { %2578 = dma.hbm_to_vmem [thread:$0]  (!%p3542_p6), %s716_s1, 16, %s718_s29, [#allocation12]  }
  0x35   : > { %s767_s11 = sshll.u32 %s4112_s15, 4  ;;  %s4113_s17 = sld [smem:[#allocation61_spill]]  ;;  %s768_s11 = int_to_ptr.hbm [resolvable:$true] %s767_s11 }
  0x36   : > { %2584 = dma.hbm_to_vmem [thread:$0]  (!%p3542_p6), %s742_s24, 16, %s744_s4, [#allocation15]  }
  0x37   : > { %2590 = dma.hbm_to_vmem [thread:$0]  (!%p3542_p6), %s768_s11, 16, %s770_s0, [#allocation18]  }
  0x38   : > { %s3341_s22 = smov [#allocation20]   ;;  %s4064_s24 = sadd.s32 4294967294, %s3335_s28  }
  0x39   : > { %s793_s2 = sshll.u32 %s3341_s22, 4  ;;  %s3567_s10 = sadd.s32 1, %s3335_s28   ;;  %s794_s2 = int_to_ptr.vmem [resolvable:$true] %s793_s2 }
  0x3a   : > { %4114 = sst [smem:[#allocation41_spill]] %s3567_s10  ;;  %s62_s6 = sadd.s32 1, %s3331_s7 }
  0x3b   : > { %s791_s29 = sshll.u32 %s4113_s17, 4  ;;  %s59_s4 = ssub.s32 %s3335_s28, %s3567_s10  ;;  %s792_s29 = int_to_ptr.hbm [resolvable:$true] %s791_s29 }
  0x3c   : > { %2596 = dma.hbm_to_vmem [thread:$0]  (!%p3542_p6), %s792_s29, 16, %s794_s2, [#allocation21]  }
  0x3d   : > { %p69_p7 = scmp.ne.s32.totalorder %s3331_s7, %s3327_s3  ;;  %p60_p8 = scmp.eq.s32.totalorder %s59_s4, 0 }
  0x3e   : > { %p70_p9 = scmp.eq.s32.totalorder %s3335_s28, 0  ;;  %p75_p10 = scmp.ne.s32.totalorder %s3327_s3, %s3323_s27 }
  0x3f   : > { %p597_p11 = scmp.eq.s32.totalorder %s3525_s9, 1  ;;  %p603_p2 = scmp.eq.s32.totalorder %s4064_s24, 1 }
  0x40   : > { %s3579_s11 = scalar_select %p60_p8, %s3331_s7, %s62_s6  }
  0x41   : > { %p71_p12 = por %p70_p9, %p69_p7  ;;  %p3583_p13 = por %p4076_p1, %p75_p10 }
  0x42   : > { %4115 = sst [smem:[#allocation42_spill]] %s3579_s11  ;;  %p3587_p0 = por %p597_p11, %p69_p7 }
  0x43   : > { %p2634_p5 = scmp.lt.s32.totalorder %s3335_s28, 2  ;;  %s4067_s5 = sand.u32 1, %s3331_s7  }
  0x44   : > { %s4117_s0 = scalar_select %p3587_p0, 1, 0 }
  0x45   : > { %p3595_p4 = por %p603_p2, %p75_p10  ;;  %s3601_s29 = sshll.u32 %s4067_s5, 2 }
  0x46   : > { %4118 = sst [smem:[#allocation43_spill]] %s4117_s0  ;;  %s3604_s22 = sshll.u32 %s3335_s28, 2 }
  0x47   : > { %s4119_s1 = scalar_select %p3595_p4, 1, 0 }
  0x48   : > { %p3606_p8 = pnand %p2634_p5, %p71_p12  ;;  %s869_s6 = sand.u32 1, %s3335_s28  }
  0x49   : > { %4120 = sst [smem:[#allocation44_spill]] %s4119_s1  ;;  %s873_s17 = scalar_lea.vmem [#allocation5], %s3601_s29 }
  0x4a   : > { %s4122_s13 = sld [smem:[#allocation47_spill]]  ;;  %s881_s11 = sshll.u32 %s873_s17, 4  ;;  %s882_s11 = int_to_ptr.vmem [resolvable:$true] %s881_s11 }
  0x4b   : > { %s4123_s27 = sld [smem:[#allocation55_spill]]  ;;  %s3619_s25 = scalar_lea.sflag [#allocation6], %s869_s6 }
  0x4c   : > { %p2915_p9 = pneg %p3606_p8 }
  0x50   : > { %s877_s15 = scalar_lea.hbm %s4122_s13, %s3604_s22  ;;  %s2918_s24 = scalar_lea.hbm %s4122_s13, 8 }
  0x51   : > { %s879_s10 = sshll.u32 %s877_s15, 4  ;;  %s700_s26 = sshll.u32 %s4123_s27, 4  ;;  %s880_s10 = int_to_ptr.hbm [resolvable:$true] %s879_s10  ;;  %s701_s26 = int_to_ptr.hbm [resolvable:$true] %s700_s26 }
  0x52   : > { %s2911_s0 = sshra.s32 %s880_s10, 4  ;;  %s2912_s0 = int_to_ptr.hbm [resolvable:$true] %s2911_s0 }
  0x53   : > { %s2913_s21 = scalar_lea.hbm %s2912_s0, 4  ;;  %p2919_p12 = scmp.lt.s32.totalorder %s2912_s0, %s4122_s13 }
  0x54   : > { %p2914_p7 = scmp.ne.s32.totalorder %s2912_s0, %s2913_s21  ;;  %p2920_p2 = scmp.lt.s32.totalorder %s2918_s24, %s2913_s21 }
  0x56   : > { %p2916_p10 = pnand %p2915_p9, %p2914_p7  ;;  %p2921_p5 = por %p2920_p2, %p2919_p12 }
  0x58   : > { %p2917_p11 = pneg %p2916_p10 }
  0x5a   : > { %p2922_p1 = pnand %p2921_p5, %p2917_p11 }
  0x5c   : > { %2925 = shalt.err (!%p2922_p1)
}
  0x5d   : > { %2609 = dma.hbm_to_vmem [thread:$0]  (!%p3606_p8), %s880_s10, 64, %s882_s11, %s3619_s25  }
  0x5e   : > { %s3342_s27 = smov [#allocation10]   ;;  %s3343_s1 = smov 64  }
  0x5f   : > { %s702_s5 = sshll.u32 %s3342_s27, 4  ;;  %s3344_s6 = smov 4   ;;  %s703_s5 = int_to_ptr.vmem [resolvable:$true] %s702_s5 }
  0x60   : > { %2575 = dma.hbm_to_vmem [thread:$0]  (!%p3542_p6), %s701_s26, 256, %s703_s5, [#allocation9], %s3343_s1, %s3343_s1, %s3344_s6  }
  0x61   : > { %s4124_s12 = sld [smem:[#allocation57_spill]]  ;;  %s3345_s17 = smov [#allocation13]  }
  0x62   : > { %s728_s15 = sshll.u32 %s3345_s17, 4  ;;  %s4125_s14 = sld [smem:[#allocation59_spill]]  ;;  %s729_s15 = int_to_ptr.vmem [resolvable:$true] %s728_s15 }
  0x63   : > { %s3346_s26 = smov [#allocation16]   ;;  %s779_s21 = sshll.u32 %s4047_s16, 4  ;;  %s780_s21 = int_to_ptr.hbm [resolvable:$true] %s779_s21 }
  0x64   : > { %s754_s4 = sshll.u32 %s3346_s26, 4  ;;  %s3348_s11 = smov [#allocation22]   ;;  %s755_s4 = int_to_ptr.vmem [resolvable:$true] %s754_s4 }
  0x65   : > { %s804_s26 = sshll.u32 %s3348_s11, 4  ;;  %s846_s27 = scalar_lea.vmem [#allocation2], %s3601_s29  ;;  %s805_s26 = int_to_ptr.vmem [resolvable:$true] %s804_s26 }
  0x66   : > { %s854_s5 = sshll.u32 %s846_s27, 4  ;;  %s855_s5 = int_to_ptr.vmem [resolvable:$true] %s854_s5 }
  0x67   : > { %s726_s0 = sshll.u32 %s4124_s12, 4  ;;  %s4127_s12 = sand.u32 1, %s3331_s7   ;;  %s727_s0 = int_to_ptr.hbm [resolvable:$true] %s726_s0 }
  0x68   : > { %s752_s24 = sshll.u32 %s4125_s14, 4  ;;  %s843_s13 = scalar_lea.sflag [#allocation3], %s4127_s12  ;;  %s753_s24 = int_to_ptr.hbm [resolvable:$true] %s752_s24 }
  0x69   : > { %2581 = dma.hbm_to_vmem [thread:$0]  (!%p3542_p6), %s727_s0, 256, %s729_s15, [#allocation12], %s3343_s1, %s3343_s1, %s3344_s6  }
  0x6a   : > { %2587 = dma.hbm_to_vmem [thread:$0]  (!%p3542_p6), %s753_s24, 256, %s755_s4, [#allocation15], %s3343_s1, %s3343_s1, %s3344_s6  }
  0x6b   : > { %s802_s0 = sshll.u32 %s4049_s18, 4  ;;  %s3347_s15 = smov [#allocation19]   ;;  %s803_s0 = int_to_ptr.hbm [resolvable:$true] %s802_s0 }
  0x6c   : > { %s781_s10 = sshll.u32 %s3347_s15, 4  ;;  %s817_s24 = sshll.u32 %s4050_s19, 4  ;;  %s782_s10 = int_to_ptr.vmem [resolvable:$true] %s781_s10  ;;  %s818_s24 = int_to_ptr.hbm [resolvable:$true] %s817_s24 }
  0x6d   : > { %2593 = dma.hbm_to_vmem [thread:$0]  (!%p3542_p6), %s780_s21, 16, %s782_s10, [#allocation18]  }
  0x6e   : > { %2599 = dma.hbm_to_vmem [thread:$0]  (!%p3542_p6), %s803_s0, 256, %s805_s26, [#allocation21], %s3343_s1, %s3343_s1, %s3344_s6  }
  0x6f   : > { %s3349_s4 = smov [#allocation23]   ;;  %s4126_s15 = sld [smem:[#allocation45_spill]] }
  0x70   : > { %s819_s28 = sshll.u32 %s3349_s4, 4  ;;  %s820_s28 = int_to_ptr.vmem [resolvable:$true] %s819_s28 }
  0x71   : > { %2602 = dma.hbm_to_vmem [thread:$0]  (!%p3542_p6), %s818_s24, 16, %s820_s28, [#allocation24]  }
  0x75   : > { %s850_s10 = scalar_lea.hbm %s4126_s15, %s3604_s22  ;;  %s3128_s8 = scalar_lea.hbm %s4126_s15, 8 }
  0x76   : > { %s852_s11 = sshll.u32 %s850_s10, 4  ;;  %s853_s11 = int_to_ptr.hbm [resolvable:$true] %s852_s11 }
  0x77   : > { %s3121_s14 = sshra.s32 %s853_s11, 4  ;;  %s3122_s14 = int_to_ptr.hbm [resolvable:$true] %s3121_s14 }
  0x78   : > { %s3123_s1 = scalar_lea.hbm %s3122_s14, 4  ;;  %p3129_p6 = scmp.lt.s32.totalorder %s3122_s14, %s4126_s15 }
  0x79   : > { %p3124_p1 = scmp.ne.s32.totalorder %s3122_s14, %s3123_s1  ;;  %p3130_p11 = scmp.lt.s32.totalorder %s3128_s8, %s3123_s1 }
  0x7b   : > { %p3126_p7 = pnand %p3124_p1, %p2915_p9  ;;  %p3131_p12 = por %p3130_p11, %p3129_p6 }
  0x7d   : > { %p3127_p10 = pneg %p3126_p7 }
  0x7f   : > { %p3132_p2 = pnand %p3131_p12, %p3127_p10 }
  0x81   : > { %3135 = shalt.err (!%p3132_p2)
}
  0x82   : > { %2606 = dma.hbm_to_vmem [thread:$0]  (!%p3606_p8), %s853_s11, 64, %s855_s5, %s843_s13  }
  0x83   : > { %s4128_s28 = sld [smem:[#allocation48_spill]]  ;;  %s892_s27 = scalar_lea.vmem [#allocation7], %s3601_s29 }
  0x84   : > { %s900_s6 = sshll.u32 %s892_s27, 4  ;;  %s901_s6 = int_to_ptr.vmem [resolvable:$true] %s900_s6 }
  0x89   : > { %s4129_s17 = smov %s4128_s28  ;;  %s896_s21 = scalar_lea.hbm %s4128_s28, %s3604_s22 }
  0x8a   : > { %s898_s10 = sshll.u32 %s896_s21, 4  ;;  %s3158_s13 = scalar_lea.hbm %s4129_s17, 8  ;;  %s899_s10 = int_to_ptr.hbm [resolvable:$true] %s898_s10 }
  0x8b   : > { %s3151_s14 = sshra.s32 %s899_s10, 4  ;;  %s3152_s14 = int_to_ptr.hbm [resolvable:$true] %s3151_s14 }
  0x8c   : > { %s3153_s1 = scalar_lea.hbm %s3152_s14, 4  ;;  %p3159_p10 = scmp.lt.s32.totalorder %s3152_s14, %s4129_s17 }
  0x8d   : > { %p3154_p5 = scmp.ne.s32.totalorder %s3152_s14, %s3153_s1  ;;  %p3160_p6 = scmp.lt.s32.totalorder %s3158_s13, %s3153_s1 }
  0x8f   : > { %p3156_p1 = pnand %p3154_p5, %p2915_p9  ;;  %p3161_p11 = por %p3160_p6, %p3159_p10 }
  0x91   : > { %p3157_p7 = pneg %p3156_p1 }
  0x93   : > { %p3162_p12 = pnand %p3161_p11, %p3157_p7 }
  0x95   : > { %3165 = shalt.err (!%p3162_p12)
}
  0x96   : > { %2612 = dma.hbm_to_vmem [thread:$0]  (!%p3606_p8), %s899_s10, 64, %s901_s6, %s3619_s25  }
  0x97   : > { %909 = sbr.rel (%p3530_p3) target bundleno = 3392 (0xd40), region = 116  ;;  %s3712_s29 = sand.u32 (!%p3530_p3), 1, %s3327_s3  }
  0x98   : > { %s3715_s22 = sshll.u32 (!%p3530_p3), %s3712_s29, 2  ;;  %s912_s26 = scalar_lea.sflag (!%p3530_p3), [#allocation3], %s3712_s29 }
  0x99   : > { %s915_s24 = scalar_lea.vmem (!%p3530_p3), [#allocation2], %s3715_s22 }
  0x9c   : > { %3282 = dma.done.wait (%p3583_p13), %s912_s26, 64  }
  0x9d   : > { %3284 = vsyncadd (%p3583_p13), %s912_s26, 4294967232  ;;  %s4080_s25 = sand.u32 1, %s3525_s9   ;;  %s925_s2 = scalar_lea.vmem [#allocation5], %s3715_s22 }
  0x9e   : > { %s922_s30 = scalar_lea.sflag [#allocation6], %s4080_s25 }
  0x9f   : > { %3286 = dma.done.wait (%p3583_p13), %s922_s30, 128  }
  0xa0   : > { %3288 = vsyncadd (%p3583_p13), %s922_s30, 4294967168  ;;  %s935_s12 = scalar_lea.vmem [#allocation7], %s3715_s22  ;;  %p4130_p3 = scmp.eq.s32.totalorder %s3525_s9, 0 }
  0xa2   : > { %3290 = dma.done.wait (%p4130_p3), [#allocation9], 272   ;;  %p4131_p8 = pmov %p4130_p3 }
  0xa3   : > { %p4132_p9 = pmov %p4130_p3 }
  0xa4   : > { %3292 = vsyncadd (%p4131_p8), [#allocation9], 4294967024 }
  0xa5   : > { %3294 = dma.done.wait (%p4132_p9), [#allocation12], 272   ;;  %p4133_p2 = pmov %p4130_p3 }
  0xa7   : > { %3296 = vsyncadd (%p4133_p2), [#allocation12], 4294967024  ;;  %p4134_p5 = pmov %p4133_p2 }
  0xa8   : > { %p4135_p1 = pmov %p4133_p2 }
  0xa9   : > { %3298 = dma.done.wait (%p4134_p5), [#allocation15], 272  }
  0xaa   : > { %3300 = vsyncadd (%p4135_p1), [#allocation15], 4294967024  ;;  %p4136_p13 = pmov %p4135_p1 }
  0xab   : > { %p4137_p7 = pmov %p4135_p1 }
  0xac   : > { %3302 = dma.done.wait (%p4136_p13), [#allocation18], 32  }
  0xad   : > { %3304 = vsyncadd (%p4137_p7), [#allocation18], 4294967264  ;;  %p4138_p10 = pmov %p4135_p1 }
  0xae   : > { %p4139_p6 = pmov %p4135_p1 }
  0xaf   : > { %3306 = dma.done.wait (%p4138_p10), [#allocation21], 272  }
  0xb0   : > { %3308 = vsyncadd (%p4139_p6), [#allocation21], 4294967024  ;;  %p4140_p11 = pmov %p4135_p1 }
  0xb1   : > { %p4141_p12 = pmov %p4135_p1 }
  0xb2   : > { %3310 = dma.done.wait (%p4140_p11), [#allocation24], 16  }
  0xb3   : > { %3312 = vsyncadd (%p4141_p12), [#allocation24], 4294967280  ;;  %s4142_s28 = sld [smem:[#allocation49_spill]]  ;;  %v3762_v2 = vld [vmem:[%s915_s24] sm:$0xf]  ;;  %vm1115_vm0 = vcmask 261120  }
  0xb4   : > { %s4144_s1 = sld [smem:[#allocation50_spill]]  ;;  %s3350_s0 = smov 96   ;;  %vm1142_vm1 = vcmask 64512   ;;  %v1135_v25 = vld [vmem:[%s925_s2] sm:$0xf]  ;;  %vm1181_vm2 = vcmask 1043456  }
  0xb5   : > { %s3351_s8 = smov 104   ;;  %s3352_s13 = smov 120   ;;  %v1136_v26 = vunpack.c.l.bf16 %v1135_v25  ;;  %vm1174_vm3 = vcmask 60416   ;;  %vm1388_vm4 = vcmask 130048   ;;  %vm1390_vm5 = vcmask 195584  }
  0xb6   : > { %s3353_s11 = smov 88   ;;  %s3354_s5 = smov 80   ;;  %vm1590_vm10 = vcmask 125952   ;;  %vm1942_vm14 = vcmask 523264  }
  0xb7   : > { %s3355_s26 = smov 72   ;;  %s3356_s24 = smov 112  }
  0xb8   : > { %s4078_s30 = smov 64   ;;  %s3358_s2 = smov 40  }
  0xb9   : > { %s4143_s21 = smov %s4142_s28  ;;  %v2496_v0 = vld [vmem:[%s4142_s28 + $0x8] sm:$0xff]  ;;  %s3359_s23 = smov 56  }
  0xba   : > { %v2495_v1 = vld [vmem:[%s4143_s21] sm:$0xff]  ;;  %1125 = vmatpush.bf16.msra.mxu0 %v2496_v0  ;;  %s3360_s4 = smov 48   ;;  %s2382_s28 = sshll.u32 %s3712_s29, 4 }
  0xbb   : > { %v2708_v3 = vld [vmem:[%s4144_s1] ss:$0 sm:$0xff]  ;;  %s3809_s10 = scalar_lea.vmem [#allocation26], %s2382_s28  ;;  %s3361_s27 = smov 8  }
  0xbc   : > { %s3362_s6 = smov 16   ;;  %s4081_s14 = smov 24  }
  0xbd   : > { %p1085_p3 = scmp.lt.s32.totalorder %s3525_s9, 1  ;;  %s3900_s22 = scalar_lea.vmem [#allocation28], %s2382_s28 }
  0xbe   : > { %1126 = vmatpush.bf16.msra.mxu0 %v2495_v1  ;;  %s4150_s1 = sld [smem:[#allocation62_spill]] }
  0xc1   : > { %2394 = vmatmul.msk.bf16.vlgmr.msra.gmra.mxu0 %vm1115_vm0, %v3762_v2 }
 0x13e   : > { %v1128_v4 = vpop.f32.mrf.mxu0 }
 0x13f   : > { %v1129_v5 = vadd.f32 %v2708_v3, %v1128_v4 }
 0x141   : > { %v1132_v6 = vmul.f32 0.35355338, %v1129_v5  ;;  %v1134_v7 = vpack.c.bf16 %v1129_v5, %v1129_v5 }
 0x143   : > { %v1133_v8 = vpack.c.bf16 %v1132_v6, %v1132_v6  ;;  %v1138_v9 = vunpack.c.l.b16 %v1134_v7 }
 0x145   : > { %v3769_v10 = vpack.c.b16 %v1138_v9, %v1138_v9  ;;  %v1199_v11 = vunpack.c.l.b16 %v1133_v8 }
 0x146   : > { %v1130_v12 = vpop.f32.mrf.mxu0 }
 0x147   : > { %1140 = vrot.lane.b32.xlu0 %v3769_v10, %s3350_s0  ;;  %v1200_v13 = vpack.c.b16 %v1199_v11, %v1199_v11 }
 0x149   : > { %1317 = vrot.lane.b32.xlu2 %v1200_v13, %s3351_s8  ;;  %1201 = vrot.lane.b32.xlu1 %v1200_v13, %s3352_s13 }
 0x14f   : > { %1203 = vrot.lane.b32.xlu0 %v3769_v10, %s3353_s11 }
 0x151   : > { %1261 = vrot.lane.b32.xlu2 %v3769_v10, %s3354_s5  ;;  %1319 = vrot.lane.b32.xlu1 %v3769_v10, %s3355_s26 }
 0x157   : > { %1259 = vrot.lane.b32.xlu0 %v1200_v13, %s3356_s24 }
 0x1a3   : > { %v1318_v14 = vpop.permute.xlu2 %1317 }
 0x1ab   : > { %v1262_v15 = vpop.permute.xlu2 %1261 }
 0x1ac   : > { %v1267_v16 = vsel %vm1142_vm1, %v1262_v15, 0 }
 0x1ad   : > { %1276 = vmatpush.bf16.xpose.msrb.mxu0 %v1267_v16 }
 0x1b9   : > { %v1141_v17 = vpop.permute.xlu0 %1140 }
 0x1ba   : > { %v1147_v18 = vsel %vm1142_vm1, %v1141_v17, 0 }
 0x1bb   : > { %1156 = vmatpush.bf16.xpose.msra.mxu1 %v1147_v18  ;;  %v1202_v19 = vpop.permute.xlu1 %1201 }
 0x1c1   : > { %v1204_v20 = vpop.permute.xlu0 %1203 }
 0x1c2   : > { %2395 = vmatmul.msk.bf16.vlgmr.msra.gmra.mxu1 %vm1142_vm1, %v1133_v8  ;;  %v1209_v21 = vsel %vm1142_vm1, %v1204_v20, 0 }
 0x1c3   : > { %1218 = vmatpush.bf16.xpose.msra.mxu3 %v1209_v21  ;;  %v1320_v22 = vpop.permute.xlu1 %1319 }
 0x1c4   : > { %v1325_v23 = vsel %vm1142_vm1, %v1320_v22, 0 }
 0x1c9   : > { %v1260_v24 = vpop.permute.xlu0 %1259 }
 0x1ca   : > { %2397 = vmatmul.msk.bf16.vlgmr.msra.gmra.mxu3 %vm1142_vm1, %v1202_v19  ;;  %2400 = vmatmul.msk.bf16.vlgmr.msrb.gmra.mxu0 %vm1142_vm1, %v1260_v24 }
 0x1cb   : > { %1334 = vmatpush.bf16.xpose.msrb.mxu3 %v1325_v23 }
 0x1da   : > { %2403 = vmatmul.msk.bf16.vlgmr.msrb.gmra.mxu3 %vm1142_vm1, %v1318_v14 }
 0x23f   : > { %v1158_v27 = vpop.f32.mrf.mxu1 }
 0x240   : > { %v1159_v28 = vadd.f32 %v1158_v27, %v1136_v26 }
 0x242   : > { %v1162_v29 = vsel %vm1142_vm1, %v1159_v28, -inf }
 0x243   : > { %1163 = vmax.xlane.f32.xlu1 %v1162_v29 }
 0x247   : > { %v1160_v30 = vpop.f32.mrf.mxu1  ;;  %v1278_v31 = vpop.f32.mrf.mxu0 }
 0x248   : > { %v1279_v36 = vadd.f32 %v1278_v31, %v1136_v26 }
 0x24a   : > { %v1282_v38 = vsel %vm1142_vm1, %v1279_v36, -inf }
 0x24d   : > { %v1220_v32 = vpop.f32.mrf.mxu3 }
 0x24e   : > { %v1221_v33 = vadd.f32 %v1220_v32, %v1136_v26 }
 0x24f   : > { %v1280_v34 = vpop.f32.mrf.mxu0 }
 0x250   : > { %v1224_v35 = vsel %vm1142_vm1, %v1221_v33, -inf }
 0x251   : > { %1225 = vmax.xlane.f32.xlu2 %v1224_v35 }
 0x255   : > { %v1222_v37 = vpop.f32.mrf.mxu3 }
 0x259   : > { %1283 = vmax.xlane.f32.xlu2 %v1282_v38 }
 0x25d   : > { %v1336_v39 = vpop.f32.mrf.mxu3 }
 0x25e   : > { %v1337_v40 = vadd.f32 %v1336_v39, %v1136_v26 }
 0x260   : > { %v1340_v41 = vsel %vm1142_vm1, %v1337_v40, -inf }
 0x261   : > { %1341 = vmax.xlane.f32.xlu0 %v1340_v41 }
 0x265   : > { %v1338_v42 = vpop.f32.mrf.mxu3 }
 0x266   : > { %v1094_v42 = vunpack.c.l.bf16 %v3762_v2 }
 0x271   : > { %1176 = vrot.lane.b32.xlu2 %v3769_v10, %s4078_s30  ;;  %s4147_s30 = sld [smem:[#allocation46_spill]] }
 0x279   : > { %1354 = vrot.lane.b32.xlu2 %v3769_v10, %s3358_s2  ;;  %s4146_s2 = sld [smem:[#allocation52_spill]] }
 0x27f   : > { %v2709_v41 = vld [vmem:[%s4146_s2] ss:$0 sm:$0xff] }
 0x2b6   : > { %v1164_v43 = vpop.xlane.xlu1 %1163 }
 0x2b7   : > { %v1165_v44 = vsub.f32 %v1159_v28, %v1164_v43 }
 0x2b9   : > { %v1166_v45 = vmul.f32 1.442695, %v1165_v44 }
 0x2bb   : > { %2721 = vpow2.f32 %v1166_v45 }
 0x2c1   : > { %v2722_v46 = vpop.eup %2721 }
 0x2c2   : > { %v1168_v47 = vsel %vm1142_vm1, %v2722_v46, 0.0 }
 0x2c3   : > { %1169 = vadd.xlane.f32.xlu1 %v1168_v47 }
 0x2c4   : > { %v1226_v48 = vpop.xlane.xlu2 %1225 }
 0x2c5   : > { %v1227_v51 = vsub.f32 %v1221_v33, %v1226_v48  ;;  %v3364_v48 = vmov 32.0  }
 0x2c7   : > { %v1228_v53 = vmul.f32 1.442695, %v1227_v51 }
 0x2cc   : > { %v1284_v49 = vpop.xlane.xlu2 %1283 }
 0x2cd   : > { %v1285_v50 = vsub.f32 %v1279_v36, %v1284_v49  ;;  %v2502_v49 = vld [vmem:[#allocation13 + $0x8] sm:$0xff] }
 0x2ce   : > { %1540 = vmatpush.bf16.msra.mxu3 %v2502_v49 }
 0x2cf   : > { %v1286_v52 = vmul.f32 1.442695, %v1285_v50  ;;  %v2501_v50 = vld [vmem:[#allocation13] sm:$0xff] }
 0x2d1   : > { %2723 = vpow2.f32 %v1286_v52 }
 0x2d2   : > { %2725 = vpow2.f32 %v1228_v53  ;;  %1541 = vmatpush.bf16.msra.mxu3 %v2501_v50 }
 0x2d4   : > { %v1177_v54 = vpop.permute.xlu2 %1176  ;;  %v1342_v55 = vpop.xlane.xlu0 %1341 }
 0x2d5   : > { %v1183_v56 = vsel %vm1181_vm2, %v1177_v54, 0  ;;  %v1343_v58 = vsub.f32 %v1337_v40, %v1342_v55 }
 0x2d6   : > { %1192 = vmatpush.bf16.msra.mxu2 %v1183_v56 }
 0x2d7   : > { %v2724_v57 = vpop.eup %2723  ;;  %v1344_v60 = vmul.f32 1.442695, %v1343_v58 }
 0x2d8   : > { %v1288_v59 = vsel %vm1142_vm1, %v2724_v57, 0.0  ;;  %v2726_v61 = vpop.eup %2725 }
 0x2d9   : > { %1289 = vadd.xlane.f32.xlu0 %v1288_v59  ;;  %2727 = vpow2.f32 %v1344_v60  ;;  %v1230_v62 = vsel %vm1142_vm1, %v2726_v61, 0.0 }
 0x2dc   : > { %1238 = vrot.lane.b32.xlu1 %v3769_v10, %s3359_s23  ;;  %v1355_v7 = vpop.permute.xlu2 %1354  ;;  %s4145_s23 = sld [smem:[#allocation51_spill]] }
 0x2df   : > { %v2728_v63 = vpop.eup %2727 }
 0x2e0   : > { %v1346_v0 = vsel %vm1142_vm1, %v2728_v63, 0.0 }
 0x2e1   : > { %1231 = vadd.xlane.f32.xlu0 %v1230_v62  ;;  %v2500_v62 = vld [vmem:[#allocation10 + $0x8] sm:$0xff] }
 0x2e2   : > { %v2498_v32 = vld [vmem:[%s4145_s23 + $0x8] sm:$0xff]  ;;  %v2497_v33 = vld [vmem:[%s4145_s23] sm:$0xff] }
 0x2e3   : > { %1422 = vmatpush.bf16.msra.mxu0 %v2498_v32 }
 0x2e7   : > { %1423 = vmatpush.bf16.msra.mxu0 %v2497_v33 }
 0x2e9   : > { %1347 = vadd.xlane.f32.xlu0 %v1346_v0  ;;  %v2712_v0 = vld [vmem:[#allocation14] ss:$0 sm:$0xff] }
 0x2fd   : > { %1296 = vrot.lane.b32.xlu0 %v3769_v10, %s3360_s4  ;;  %v1360_v10 = vsel %vm1181_vm2, %v1355_v7, 0  ;;  %s1086_s4 = scalar_select %p1085_p3, %s3525_s9, 1 }
 0x2ff   : > { %s2493_s25 = sshll.u32 %s1086_s4, 3  ;;  %s4148_s4 = sld [smem:[#allocation53_spill]] }
 0x300   : > { %s1089_s2 = scalar_lea.vmem %s4147_s30, %s2493_s25  ;;  %s2511_s25 = sshll.u32 %s3525_s9, 4 }
 0x301   : > { %v2494_v51 = vld [vmem:[%s1089_s2] sm:$0xff]  ;;  %s2030_s2 = sshll.u32 %s3809_s10, 4  ;;  %s2031_s2 = int_to_ptr.vmem [resolvable:$true] %s2030_s2 }
 0x302   : > { %2436 = vmatmul.msk.bf16.vlgmr.msra.gmra.mxu3 %vm1115_vm0, %v2494_v51 }
 0x336   : > { %v1170_v1 = vpop.xlane.xlu1 %1169 }
 0x337   : > { %2729 = vrcp.f32 %v1170_v1 }
 0x33d   : > { %v2730_v3 = vpop.eup %2729 }
 0x33e   : > { %v1172_v4 = vmul.f32 %v2730_v3, %v2722_v46 }
 0x340   : > { %v1173_v5 = vpack.c.bf16 %v1172_v4, %v1172_v4 }
 0x342   : > { %1175 = vst.msk [vmem:[%s3809_s10] sm:$0xf] %vm1174_vm3, %v1173_v5  ;;  %2396 = vmatmul.msk.bf16.vlgmr.msra.gmra.mxu2 %vm1142_vm1, %v1173_v5 }
 0x34c   : > { %v1290_v6 = vpop.xlane.xlu0 %1289 }
 0x34d   : > { %2731 = vrcp.f32 %v1290_v6 }
 0x34e   : > { %v1239_v8 = vpop.permute.xlu1 %1238 }
 0x34f   : > { %v1244_v9 = vsel %vm1181_vm2, %v1239_v8, 0 }
 0x350   : > { %1253 = vmatpush.bf16.msrb.mxu2 %v1244_v9 }
 0x353   : > { %v2732_v11 = vpop.eup %2731 }
 0x354   : > { %1369 = vmatpush.bf16.msra.mxu2 %v1360_v10  ;;  %v1292_v12 = vmul.f32 %v2732_v11, %v2724_v57  ;;  %v1232_v13 = vpop.xlane.xlu0 %1231 }
 0x355   : > { %2733 = vrcp.f32 %v1232_v13 }
 0x356   : > { %v1293_v14 = vpack.c.bf16 %v1292_v12, %v1292_v12 }
 0x358   : > { %2401 = vst.msk [vmem:[%s3809_s10 + $0x8] sm:$0xf] %vm1174_vm3, %v1293_v14 }
 0x35b   : > { %v2734_v15 = vpop.eup %2733 }
 0x35c   : > { %v1234_v16 = vmul.f32 %v2734_v15, %v2726_v61  ;;  %v1348_v17 = vpop.xlane.xlu0 %1347 }
 0x35d   : > { %2735 = vrcp.f32 %v1348_v17 }
 0x35e   : > { %v1235_v18 = vpack.c.bf16 %v1234_v16, %v1234_v16  ;;  %2737 = vrcp.f32 %v3364_v48 }
 0x360   : > { %2398 = vst.msk [vmem:[%s3809_s10 + $0x4] sm:$0xf] %vm1174_vm3, %v1235_v18  ;;  %2399 = vmatmul.msk.bf16.vlgmr.msrb.gmra.mxu2 %vm1142_vm1, %v1235_v18 }
 0x363   : > { %v2736_v19 = vpop.eup %2735 }
 0x364   : > { %v1350_v20 = vmul.f32 %v2736_v19, %v2728_v63  ;;  %v2738_v2 = vpop.eup %2737  ;;  %v2499_v63 = vld [vmem:[#allocation10] sm:$0xff] }
 0x365   : > { %v1434_v52 = vmul.f32 32.0, %v2738_v2  ;;  %vm1438_vm6 = vweird.f32 %v2738_v2 }
 0x366   : > { %v1351_v21 = vpack.c.bf16 %v1350_v20, %v1350_v20 }
 0x367   : > { %v1435_v53 = vsub.f32 1.0, %v1434_v52 }
 0x368   : > { %2404 = vst.msk [vmem:[%s3809_s10 + $0xc] sm:$0xf] %vm1174_vm3, %v1351_v21 }
 0x369   : > { %v1436_v54 = vmul.f32 %v2738_v2, %v1435_v53 }
 0x36b   : > { %v1437_v55 = vadd.f32 %v2738_v2, %v1436_v54 }
 0x36d   : > { %v3850_v56 = vsel %vm1438_vm6, %v2738_v2, %v1437_v55 }
 0x36f   : > { %v1297_v22 = vpop.permute.xlu0 %1296 }
 0x370   : > { %2405 = vmatmul.msk.bf16.vlgmr.msra.gmra.mxu2 %vm1142_vm1, %v1351_v21  ;;  %v1302_v23 = vsel %vm1181_vm2, %v1297_v22, 0  ;;  %v2710_v21 = vld [vmem:[%s4148_s4] ss:$0 sm:$0xff] }
 0x371   : > { %1311 = vmatpush.bf16.msrb.mxu1 %v1302_v23  ;;  %v2711_v23 = vld [vmem:[#allocation8] ss:$0 sm:$0xff] }
 0x374   : > { %2402 = vmatmul.msk.bf16.vlgmr.msrb.gmra.mxu1 %vm1142_vm1, %v1293_v14 }
 0x375   : > { %1499 = vmatpush.bf16.msra.mxu1 %v2500_v62 }
 0x379   : > { %1500 = vmatpush.bf16.msra.mxu1 %v2499_v63 }
 0x385   : > { %v1543_v1 = vpop.f32.mrf.mxu3 }
 0x386   : > { %v1544_v5 = vadd.f32 %v2712_v0, %v1543_v1 }
 0x388   : > { %v1550_v7 = vpack.c.bf16 %v1544_v5, %v1544_v5 }
 0x38a   : > { %v1556_v10 = vunpack.c.l.b16 %v1550_v7 }
 0x38d   : > { %v1545_v8 = vpop.f32.mrf.mxu3 }
 0x38e   : > { %v1546_v9 = vadd.f32 %v2712_v0, %v1545_v8 }
 0x390   : > { %v1551_v11 = vpack.c.bf16 %v1546_v9, %v1546_v9 }
 0x392   : > { %v1557_v14 = vunpack.c.l.b16 %v1551_v11 }
 0x394   : > { %v3855_v16 = vpack.c.b16 %v1557_v14, %v1556_v10 }
 0x396   : > { %1616 = vrot.lane.b32.xlu0 %v3855_v16, %s3352_s13  ;;  %v1563_v18 = vsel %vm1142_vm1, %v3855_v16, 0 }
 0x397   : > { %1572 = vmatpush.bf16.xpose.msrb.mxu2 %v1563_v18 }
 0x39e   : > { %1672 = vrot.lane.b32.xlu0 %v3855_v16, %s3356_s24 }
 0x3c5   : > { %v1194_v24 = vpop.f32.mrf.mxu2 }
 0x3cd   : > { %v1196_v25 = vpop.f32.mrf.mxu2 }
 0x3e3   : > { %v1255_v26 = vpop.f32.mrf.mxu2 }
 0x3e4   : > { %1376 = vrot.lane.b32.xlu1 %v1255_v26, %s3361_s27 }
 0x3eb   : > { %v1257_v27 = vpop.f32.mrf.mxu2 }
 0x3f1   : > { %v1313_v28 = vpop.f32.mrf.mxu1 }
 0x3f2   : > { %1380 = vrot.lane.b32.xlu2 %v1313_v28, %s3362_s6 }
 0x3f3   : > { %v1371_v29 = vpop.f32.mrf.mxu2 }
 0x3f4   : > { %1384 = vrot.lane.b32.xlu1 %v1371_v29, %s4081_s14 }
 0x3f9   : > { %v1315_v30 = vpop.f32.mrf.mxu1 }
 0x3fa   : > { %v2713_v30 = vld [vmem:[#allocation11] ss:$0 sm:$0xff] }
 0x3fb   : > { %v1373_v31 = vpop.f32.mrf.mxu2 }
 0x408   : > { %v1617_v28 = vpop.permute.xlu0 %1616 }
 0x409   : > { %v1622_v29 = vsel %vm1142_vm1, %v1617_v28, 0 }
 0x40a   : > { %1631 = vmatpush.bf16.xpose.msrb.mxu1 %v1622_v29 }
 0x44c   : > { %v1381_v36 = vpop.permute.xlu2 %1380 }
 0x456   : > { %v1377_v34 = vpop.permute.xlu1 %1376 }
 0x457   : > { %v1387_v35 = vsel %vm1142_vm1, %v1194_v24, %v1377_v34  ;;  %v1673_v34 = vpop.permute.xlu0 %1672 }
 0x458   : > { %v1389_v37 = vsel %vm1388_vm4, %v1387_v35, %v1381_v36  ;;  %v1678_v35 = vsel %vm1142_vm1, %v1673_v34, 0 }
 0x459   : > { %1687 = vmatpush.bf16.xpose.msra.mxu2 %v1678_v35 }
 0x466   : > { %v1385_v38 = vpop.permute.xlu1 %1384 }
 0x467   : > { %v1391_v39 = vsel %vm1390_vm5, %v1389_v37, %v1385_v38 }
 0x468   : > { %v1392_v40 = vpack.c.bf16 %v1391_v39, %v1391_v39 }
 0x46a   : > { %2414 = vmatmul.msk.bf16.vlgmr.msra.gmra.mxu0 %vm1115_vm0, %v1392_v40 }
 0x4e7   : > { %v1425_v43 = vpop.f32.mrf.mxu0 }
 0x4e8   : > { %v1426_v44 = vadd.f32 %v2709_v41, %v1425_v43  ;;  %v1552_v41 = vld [vmem:[%s935_s12] sm:$0xf]  ;;  %s4149_s12 = smov 24  }
 0x4ea   : > { %v1429_v45 = vadd.f32 %v1426_v44, %v1094_v42  ;;  %v1553_v44 = vunpack.c.l.bf16 %v1552_v41 }
 0x4ec   : > { %v1430_v46 = vsel %vm1115_vm0, %v1429_v45, 0.0 }
 0x4ed   : > { %1431 = vadd.xlane.f32.xlu2 %v1430_v46 }
 0x4ef   : > { %v1427_v47 = vpop.f32.mrf.mxu0 }
 0x560   : > { %v1432_v57 = vpop.xlane.xlu2 %1431 }
 0x561   : > { %v1440_v58 = vmul.f32 %v3850_v56, %v1432_v57 }
 0x563   : > { %v1441_v59 = vsub.f32 %v1429_v45, %v1440_v58 }
 0x565   : > { %v1442_v60 = vmul.f32 %v1441_v59, %v1441_v59 }
 0x567   : > { %v1443_v61 = vsel %vm1115_vm0, %v1442_v60, 0.0 }
 0x568   : > { %1444 = vadd.xlane.f32.xlu1 %v1443_v61 }
 0x5db   : > { %v1445_v3 = vpop.xlane.xlu1 %1444 }
 0x5dc   : > { %v1446_v4 = vmul.f32 %v1445_v3, %v3850_v56 }
 0x5de   : > { %v1447_v6 = vadd.f32 1e-06, %v1446_v4 }
 0x5e0   : > { %2739 = vrsqrt.f32 %v1447_v6  ;;  %vm1454_vm8 = vweird.f32 %v1447_v6 }
 0x5e6   : > { %v2740_v12 = vpop.eup %2739 }
 0x5e7   : > { %v1449_v13 = vmul.f32 %v2740_v12, %v1447_v6  ;;  %vm1455_vm7 = vweird.f32 %v2740_v12 }
 0x5e8   : > { %vm1456_vm9 = vmor %vm1454_vm8, %vm1455_vm7 }
 0x5e9   : > { %v1450_v15 = vmul.f32 %v2740_v12, %v1449_v13 }
 0x5eb   : > { %v1451_v17 = vmul.f32 0.5, %v1450_v15 }
 0x5ed   : > { %v1452_v19 = vsub.f32 1.5, %v1451_v17 }
 0x5ef   : > { %v1453_v20 = vmul.f32 %v2740_v12, %v1452_v19 }
 0x5f1   : > { %v1457_v22 = vsel %vm1456_vm9, %v2740_v12, %v1453_v20 }
 0x5f2   : > { %v1458_v24 = vmul.f32 %v1457_v22, %v1441_v59 }
 0x5f4   : > { %v1463_v25 = vmul.f32 %v2710_v21, %v1458_v24 }
 0x5f6   : > { %v3866_v26 = vadd.f32 %v2711_v23, %v1463_v25 }
 0x5f8   : > { %v1469_v27 = vpack.c.bf16 %v3866_v26, %v3866_v26 }
 0x5fa   : > { %2423 = vmatmul.msk.bf16.vlgmr.msra.gmra.mxu1 %vm1115_vm0, %v1469_v27 }
 0x677   : > { %v1502_v31 = vpop.f32.mrf.mxu1 }
 0x678   : > { %v1503_v32 = vadd.f32 %v2713_v30, %v1502_v31 }
 0x67a   : > { %v1548_v33 = vmul.f32 0.35355338, %v1503_v32 }
 0x67c   : > { %v1549_v36 = vpack.c.bf16 %v1548_v33, %v1548_v33 }
 0x67e   : > { %v1612_v37 = vunpack.c.l.b16 %v1549_v36  ;;  %2437 = vmatmul.msk.bf16.vlgmr.msrb.gmra.mxu2 %vm1142_vm1, %v1549_v36 }
 0x67f   : > { %v1504_v38 = vpop.f32.mrf.mxu1 }
 0x680   : > { %v1613_v39 = vpack.c.b16 %v1612_v37, %v1612_v37 }
 0x682   : > { %1726 = vrot.lane.b32.xlu2 %v1613_v39, %s3351_s8  ;;  %1614 = vrot.lane.b32.xlu0 %v1613_v39, %s3352_s13 }
 0x68a   : > { %1728 = vrot.lane.b32.xlu0 %v3855_v16, %s3351_s8 }
 0x692   : > { %1670 = vrot.lane.b32.xlu0 %v1613_v39, %s3356_s24  ;;  %s4154_s24 = sand.u32 1, %s3525_s9  }
 0x693   : > { %s3958_s28 = scalar_lea.sflag [#allocation27], %s4154_s24 }
 0x6dc   : > { %v1727_v47 = vpop.permute.xlu2 %1726 }
 0x6f4   : > { %v1615_v40 = vpop.permute.xlu0 %1614 }
 0x6f5   : > { %2439 = vmatmul.msk.bf16.vlgmr.msrb.gmra.mxu1 %vm1142_vm1, %v1615_v40 }
 0x6fc   : > { %v1729_v42 = vpop.permute.xlu0 %1728 }
 0x6fd   : > { %v1734_v43 = vsel %vm1142_vm1, %v1729_v42, 0 }
 0x6fe   : > { %1743 = vmatpush.bf16.xpose.msra.mxu1 %v1734_v43 }
 0x701   : > { %v1574_v45 = vpop.f32.mrf.mxu2 }
 0x702   : > { %v1575_v46 = vadd.f32 %v1574_v45, %v1553_v44 }
 0x704   : > { %v1671_v48 = vpop.permute.xlu0 %1670  ;;  %v1578_v49 = vsel %vm1388_vm4, %v1575_v46, -inf }
 0x705   : > { %2442 = vmatmul.msk.bf16.vlgmr.msra.gmra.mxu2 %vm1142_vm1, %v1671_v48  ;;  %2445 = vmatmul.msk.bf16.vlgmr.msra.gmra.mxu1 %vm1142_vm1, %v1727_v47 }
 0x706   : > { %1579 = vmax.xlane.f32.xlu0 %v1578_v49  ;;  %v2504_v49 = vld [vmem:[#allocation16 + $0x8] sm:$0xff] }
 0x707   : > { %1827 = vmatpush.bf16.msrb.mxu2 %v2504_v49 }
 0x709   : > { %v1576_v50 = vpop.f32.mrf.mxu2 }
 0x70a   : > { %v2503_v50 = vld [vmem:[#allocation16] sm:$0xff] }
 0x70b   : > { %1828 = vmatpush.bf16.msrb.mxu2 %v2503_v50 }
 0x71a   : > { %1592 = vrot.lane.b32.xlu0 %v3855_v16, %s3350_s0 }
 0x722   : > { %1763 = vrot.lane.b32.xlu0 %v3855_v16, %s3355_s26 }
 0x772   : > { %v1633_v2 = vpop.f32.mrf.mxu1 }
 0x773   : > { %v1634_v51 = vadd.f32 %v1633_v2, %v1553_v44 }
 0x775   : > { %v1637_v52 = vsel %vm1388_vm4, %v1634_v51, -inf }
 0x776   : > { %1638 = vmax.xlane.f32.xlu1 %v1637_v52 }
 0x779   : > { %v1580_v54 = vpop.xlane.xlu0 %1579 }
 0x77a   : > { %v1635_v53 = vpop.f32.mrf.mxu1  ;;  %v1581_v55 = vsub.f32 %v1575_v46, %v1580_v54 }
 0x77c   : > { %v1582_v58 = vmul.f32 1.442695, %v1581_v55 }
 0x77e   : > { %2741 = vpow2.f32 %v1582_v58  ;;  %v2714_v58 = vld [vmem:[#allocation17] ss:$0 sm:$0xff] }
 0x782   : > { %v1745_v57 = vpop.f32.mrf.mxu1 }
 0x783   : > { %v1746_v4 = vadd.f32 %v1745_v57, %v1553_v44 }
 0x784   : > { %v2742_v0 = vpop.eup %2741 }
 0x785   : > { %v1584_v3 = vsel %vm1388_vm4, %v2742_v0, 0.0  ;;  %v1749_v5 = vsel %vm1388_vm4, %v1746_v4, -inf }
 0x788   : > { %v1689_v59 = vpop.f32.mrf.mxu2 }
 0x789   : > { %v1690_v60 = vadd.f32 %v1689_v59, %v1553_v44 }
 0x78a   : > { %v1747_v61 = vpop.f32.mrf.mxu1 }
 0x78b   : > { %v1693_v62 = vsel %vm1388_vm4, %v1690_v60, -inf }
 0x78c   : > { %v1593_v63 = vpop.permute.xlu0 %1592  ;;  %1694 = vmax.xlane.f32.xlu1 %v1693_v62 }
 0x78d   : > { %1605 = vmatpush.bf16.msrb.mxu0 %v1593_v63 }
 0x790   : > { %v1691_v1 = vpop.f32.mrf.mxu2 }
 0x794   : > { %1585 = vadd.xlane.f32.xlu1 %v1584_v3  ;;  %v1764_v28 = vpop.permute.xlu0 %1763 }
 0x79c   : > { %1750 = vmax.xlane.f32.xlu1 %v1749_v5 }
 0x7b5   : > { %1651 = vrot.lane.b32.xlu1 %v3855_v16, %s3353_s11 }
 0x7e9   : > { %v1639_v6 = vpop.xlane.xlu1 %1638 }
 0x7ea   : > { %v1640_v7 = vsub.f32 %v1634_v51, %v1639_v6  ;;  %v2506_v6 = vld [vmem:[#allocation22 + $0x8] sm:$0xff] }
 0x7ec   : > { %v1641_v8 = vmul.f32 1.442695, %v1640_v7  ;;  %v2505_v7 = vld [vmem:[#allocation22] sm:$0xff] }
 0x7ee   : > { %2743 = vpow2.f32 %v1641_v8 }
 0x7f4   : > { %v2744_v9 = vpop.eup %2743 }
 0x7f5   : > { %v1643_v10 = vsel %vm1388_vm4, %v2744_v9, 0.0 }
 0x7f6   : > { %1644 = vadd.xlane.f32.xlu2 %v1643_v10  ;;  %v2509_v10 = vld [vmem:[%s4051_s20 + $0x10] sm:$0xff] }
 0x7ff   : > { %v1695_v11 = vpop.xlane.xlu1 %1694 }
 0x800   : > { %v1696_v12 = vsub.f32 %v1690_v60, %v1695_v11 }
 0x802   : > { %v1697_v13 = vmul.f32 1.442695, %v1696_v12  ;;  %v2508_v12 = vld [vmem:[%s4051_s20 + $0x8] sm:$0xff] }
 0x804   : > { %2745 = vpow2.f32 %v1697_v13 }
 0x807   : > { %v1586_v14 = vpop.xlane.xlu1 %1585 }
 0x808   : > { %2747 = vrcp.f32 %v1586_v14 }
 0x80a   : > { %v2746_v15 = vpop.eup %2745 }
 0x80b   : > { %v1699_v17 = vsel %vm1388_vm4, %v2746_v15, 0.0 }
 0x80c   : > { %1700 = vadd.xlane.f32.xlu2 %v1699_v17 }
 0x80e   : > { %v2748_v18 = vpop.eup %2747 }
 0x80f   : > { %v1588_v19 = vmul.f32 %v2748_v18, %v2742_v0  ;;  %v1751_v20 = vpop.xlane.xlu1 %1750 }
 0x810   : > { %v1752_v21 = vsub.f32 %v1746_v4, %v1751_v20  ;;  %v2715_v20 = vld [vmem:[#allocation19] ss:$0 sm:$0xff] }
 0x811   : > { %v1589_v22 = vpack.c.bf16 %v1588_v19, %v1588_v19 }
 0x812   : > { %v1753_v23 = vmul.f32 1.442695, %v1752_v21 }
 0x813   : > { %1591 = vst.msk [vmem:[%s3900_s22] sm:$0xf] %vm1590_vm10, %v1589_v22  ;;  %2438 = vmatmul.msk.bf16.vlgmr.msrb.gmra.mxu0 %vm1388_vm4, %v1589_v22  ;;  %v2716_v22 = vld [vmem:[#allocation20] ss:$0 sm:$0xff] }
 0x814   : > { %2749 = vpow2.f32 %v1753_v23 }
 0x81a   : > { %v2750_v24 = vpop.eup %2749 }
 0x81b   : > { %v1755_v25 = vsel %vm1388_vm4, %v2750_v24, 0.0 }
 0x81c   : > { %1756 = vadd.xlane.f32.xlu1 %v1755_v25 }
 0x824   : > { %1707 = vrot.lane.b32.xlu2 %v3855_v16, %s3354_s5  ;;  %s4153_s5 = sld [smem:[#allocation67_spill]] }
 0x827   : > { %v1652_v27 = vpop.permute.xlu1 %1651 }
 0x828   : > { %1664 = vmatpush.bf16.msrb.mxu3 %v1652_v27 }
 0x82a   : > { %s2046_s26 = scalar_lea.hbm %s4153_s5, %s2511_s25 }
 0x82c   : > { %1776 = vmatpush.bf16.msra.mxu3 %v1764_v28  ;;  %v2507_v28 = vld [vmem:[%s4051_s20] sm:$0xff] }
 0x869   : > { %v1645_v29 = vpop.xlane.xlu2 %1644 }
 0x86a   : > { %2751 = vrcp.f32 %v1645_v29  ;;  %v2717_v29 = vld [vmem:[#allocation23] ss:$0 sm:$0xff] }
 0x870   : > { %v2752_v30 = vpop.eup %2751 }
 0x871   : > { %v1647_v31 = vmul.f32 %v2752_v30, %v2744_v9 }
 0x873   : > { %v1648_v32 = vpack.c.bf16 %v1647_v31, %v1647_v31 }
 0x875   : > { %2440 = vst.msk [vmem:[%s3900_s22 + $0x4] sm:$0xf] %vm1590_vm10, %v1648_v32  ;;  %2441 = vmatmul.msk.bf16.vlgmr.msrb.gmra.mxu3 %vm1388_vm4, %v1648_v32 }
 0x87f   : > { %v1701_v33 = vpop.xlane.xlu2 %1700 }
 0x880   : > { %2753 = vrcp.f32 %v1701_v33 }
 0x886   : > { %v2754_v34 = vpop.eup %2753 }
 0x887   : > { %v1703_v35 = vmul.f32 %v2754_v34, %v2746_v15  ;;  %v1708_v16 = vpop.permute.xlu2 %1707 }
 0x888   : > { %1720 = vmatpush.bf16.msra.mxu0 %v1708_v16 }
 0x889   : > { %v1704_v36 = vpack.c.bf16 %v1703_v35, %v1703_v35  ;;  %v2718_v35 = vld [vmem:[%s4150_s1] ss:$0 sm:$0xff] }
 0x88b   : > { %2443 = vst.msk [vmem:[%s3900_s22 + $0x8] sm:$0xf] %vm1590_vm10, %v1704_v36  ;;  %2444 = vmatmul.msk.bf16.vlgmr.msra.gmra.mxu0 %vm1388_vm4, %v1704_v36 }
 0x88c   : > { %1897 = vmatpush.bf16.msrb.mxu0 %v2506_v6 }
 0x88f   : > { %v1757_v37 = vpop.xlane.xlu1 %1756 }
 0x890   : > { %2755 = vrcp.f32 %v1757_v37  ;;  %v1607_v38 = vpop.f32.mrf.mxu0  ;;  %1898 = vmatpush.bf16.msrb.mxu0 %v2505_v7 }
 0x896   : > { %v2756_v39 = vpop.eup %2755 }
 0x897   : > { %v1759_v40 = vmul.f32 %v2756_v39, %v2750_v24 }
 0x898   : > { %v1609_v41 = vpop.f32.mrf.mxu0 }
 0x899   : > { %v1760_v42 = vpack.c.bf16 %v1759_v40, %v1759_v40 }
 0x89b   : > { %2446 = vst.msk [vmem:[%s3900_s22 + $0xc] sm:$0xf] %vm1590_vm10, %v1760_v42  ;;  %2447 = vmatmul.msk.bf16.vlgmr.msra.gmra.mxu3 %vm1388_vm4, %v1760_v42 }
 0x8f8   : > { %v1666_v43 = vpop.f32.mrf.mxu3 }
 0x8f9   : > { %1783 = vrot.lane.b32.xlu0 %v1666_v43, %s3361_s27 }
 0x900   : > { %v1668_v44 = vpop.f32.mrf.mxu3 }
 0x908   : > { %v1722_v45 = vpop.f32.mrf.mxu0 }
 0x909   : > { %1787 = vrot.lane.b32.xlu0 %v1722_v45, %s3362_s6 }
 0x910   : > { %v1724_v46 = vpop.f32.mrf.mxu0 }
 0x91e   : > { %v1778_v47 = vpop.f32.mrf.mxu3 }
 0x91f   : > { %1791 = vrot.lane.b32.xlu0 %v1778_v47, %s4149_s12  ;;  %s4152_s12 = sld [smem:[#allocation66_spill]] }
 0x925   : > { %s2029_s0 = scalar_lea.hbm %s4152_s12, %s2511_s25  ;;  %s3201_s14 = scalar_lea.hbm %s4152_s12, 32 }
 0x926   : > { %v1780_v48 = vpop.f32.mrf.mxu3  ;;  %s2032_s8 = sshll.u32 %s2029_s0, 4  ;;  %s2033_s8 = int_to_ptr.hbm [resolvable:$true] %s2032_s8 }
 0x927   : > { %s3195_s27 = sshra.s32 %s2033_s8, 4  ;;  %s3196_s27 = int_to_ptr.hbm [resolvable:$true] %s3195_s27 }
 0x928   : > { %s3197_s6 = scalar_lea.hbm %s3196_s27, 16  ;;  %p3202_p5 = scmp.lt.s32.totalorder %s3196_s27, %s4152_s12 }
 0x929   : > { %p3198_p8 = scmp.ne.s32.totalorder %s3196_s27, %s3197_s6  ;;  %p3203_p1 = scmp.lt.s32.totalorder %s3201_s14, %s3197_s6 }
 0x92b   : > { %p3199_p9 = pnand %p3198_p8, %p3587_p0  ;;  %p3204_p13 = por %p3203_p1, %p3202_p5 }
 0x92d   : > { %p3200_p2 = pneg %p3199_p9 }
 0x92f   : > { %p3205_p7 = pnand %p3204_p13, %p3200_p2 }
 0x96b   : > { %v1784_v2 = vpop.permute.xlu0 %1783 }
 0x96c   : > { %v1794_v52 = vsel %vm1142_vm1, %v1607_v38, %v1784_v2 }
 0x97b   : > { %v1788_v51 = vpop.permute.xlu0 %1787 }
 0x97c   : > { %v1795_v53 = vsel %vm1388_vm4, %v1794_v52, %v1788_v51 }
 0x991   : > { %v1792_v54 = vpop.permute.xlu0 %1791 }
 0x992   : > { %v1796_v55 = vsel %vm1390_vm5, %v1795_v53, %v1792_v54 }
 0x993   : > { %v1797_v57 = vpack.c.bf16 %v1796_v55, %v1796_v55 }
 0x995   : > { %2456 = vmatmul.msk.bf16.vlgmr.msrb.gmra.mxu2 %vm1115_vm0, %v1797_v57 }
 0xa18   : > { %v1830_v59 = vpop.f32.mrf.mxu2 }
 0xa19   : > { %v1831_v60 = vadd.f32 %v2714_v58, %v1830_v59 }
 0xa1b   : > { %v1834_v61 = vadd.f32 %v1831_v60, %v3866_v26  ;;  %v2510_v26 = vld [vmem:[%s4051_s20 + $0x18] sm:$0xff] }
 0xa1c   : > { %1950 = vmatpush.bf16.msrb.mxu1 %v2510_v26 }
 0xa1d   : > { %v1835_v62 = vsel %vm1115_vm0, %v1834_v61, 0.0 }
 0xa1e   : > { %1836 = vadd.xlane.f32.xlu2 %v1835_v62 }
 0xa20   : > { %v1832_v63 = vpop.f32.mrf.mxu2  ;;  %1951 = vmatpush.bf16.msrb.mxu1 %v2509_v10 }
 0xa24   : > { %1952 = vmatpush.bf16.msrb.mxu1 %v2508_v12 }
 0xa28   : > { %1953 = vmatpush.bf16.msrb.mxu1 %v2507_v28 }
 0xa91   : > { %v1837_v0 = vpop.xlane.xlu2 %1836 }
 0xa92   : > { %v1838_v1 = vmul.f32 %v1837_v0, %v3850_v56 }
 0xa94   : > { %v1839_v3 = vsub.f32 %v1834_v61, %v1838_v1 }
 0xa96   : > { %v1840_v4 = vmul.f32 %v1839_v3, %v1839_v3 }
 0xa98   : > { %v1841_v5 = vsel %vm1115_vm0, %v1840_v4, 0.0 }
 0xa99   : > { %1842 = vadd.xlane.f32.xlu0 %v1841_v5 }
 0xb0c   : > { %v1843_v8 = vpop.xlane.xlu0 %1842 }
 0xb0d   : > { %v1844_v9 = vmul.f32 %v1843_v8, %v3850_v56 }
 0xb0f   : > { %v1845_v11 = vadd.f32 1e-06, %v1844_v9 }
 0xb11   : > { %2757 = vrsqrt.f32 %v1845_v11  ;;  %vm1852_vm12 = vweird.f32 %v1845_v11 }
 0xb17   : > { %v2758_v13 = vpop.eup %2757 }
 0xb18   : > { %v1847_v14 = vmul.f32 %v2758_v13, %v1845_v11  ;;  %vm1853_vm11 = vweird.f32 %v2758_v13 }
 0xb19   : > { %vm1854_vm13 = vmor %vm1852_vm12, %vm1853_vm11 }
 0xb1a   : > { %v1848_v15 = vmul.f32 %v2758_v13, %v1847_v14 }
 0xb1c   : > { %v1849_v17 = vmul.f32 0.5, %v1848_v15 }
 0xb1e   : > { %v1850_v18 = vsub.f32 1.5, %v1849_v17 }
 0xb20   : > { %v1851_v19 = vmul.f32 %v2758_v13, %v1850_v18 }
 0xb22   : > { %v1855_v21 = vsel %vm1854_vm13, %v2758_v13, %v1851_v19 }
 0xb23   : > { %v1856_v23 = vmul.f32 %v1855_v21, %v1839_v3 }
 0xb25   : > { %v1861_v24 = vmul.f32 %v2715_v20, %v1856_v23 }
 0xb27   : > { %v1866_v25 = vadd.f32 %v2716_v22, %v1861_v24 }
 0xb29   : > { %v1867_v27 = vpack.c.bf16 %v1866_v25, %v1866_v25 }
 0xb2b   : > { %2465 = vmatmul.msk.bf16.vlgmr.msrb.gmra.mxu0 %vm1115_vm0, %v1867_v27 }
 0xba8   : > { %v1900_v30 = vpop.f32.mrf.mxu0 }
 0xba9   : > { %v1901_v31 = vadd.f32 %v2717_v29, %v1900_v30 }
 0xbab   : > { %v1904_v32 = vmax.f32 %v1901_v31, 0.0 }
 0xbad   : > { %v1905_v33 = vpack.c.bf16 %v1904_v32, %v1904_v32 }
 0xbaf   : > { %2482 = vmatmul.msk.bf16.vlgmr.msrb.gmra.mxu1 %vm1942_vm14, %v1905_v33 }
 0xbb0   : > { %v1902_v34 = vpop.f32.mrf.mxu0 }
 0xc2c   : > { %v1955_v16 = vpop.f32.mrf.mxu1 }
 0xc2d   : > { %v1956_v36 = vadd.f32 %v2718_v35, %v1955_v16 }
 0xc2f   : > { %v1959_v37 = vadd.f32 %v1956_v36, %v1866_v25 }
 0xc31   : > { %v1960_v38 = vsel %vm1115_vm0, %v1959_v37, 0.0 }
 0xc32   : > { %1961 = vadd.xlane.f32.xlu1 %v1960_v38 }
 0xc34   : > { %v1957_v39 = vpop.f32.mrf.mxu1 }
 0xca5   : > { %v1962_v40 = vpop.xlane.xlu1 %1961 }
 0xca6   : > { %v1963_v41 = vmul.f32 %v1962_v40, %v3850_v56 }
 0xca8   : > { %v1964_v42 = vsub.f32 %v1959_v37, %v1963_v41 }
 0xcaa   : > { %v1965_v43 = vmul.f32 %v1964_v42, %v1964_v42 }
 0xcac   : > { %v1966_v44 = vsel %vm1115_vm0, %v1965_v43, 0.0 }
 0xcad   : > { %1967 = vadd.xlane.f32.xlu1 %v1966_v44 }
 0xcae   : > { %3208 = shalt.err (!%p3205_p7)
}
 0xcaf   : > { %s3365_s25 = smov 4   ;;  %s4155_s13 = smov 64  }
 0xcb0   : > { %2564 = dma.vmem_to_hbm [thread:$0]  (%p3587_p0), %s2031_s2, 256, %s2033_s8, %s3958_s28, %s4155_s13, %s4155_s13, %s3365_s25  }
 0xcb1   : > { %s2047_s11 = sshll.u32 %s3900_s22, 4  ;;  %s2049_s24 = sshll.u32 %s2046_s26, 4  ;;  %s2048_s11 = int_to_ptr.vmem [resolvable:$true] %s2047_s11  ;;  %s2050_s24 = int_to_ptr.hbm [resolvable:$true] %s2049_s24 }
 0xcb2   : > { %s3223_s10 = sshra.s32 %s2050_s24, 4  ;;  %s3229_s14 = scalar_lea.hbm %s4153_s5, 32  ;;  %s3224_s10 = int_to_ptr.hbm [resolvable:$true] %s3223_s10 }
 0xcb3   : > { %s3225_s27 = scalar_lea.hbm %s3224_s10, 16  ;;  %p3230_p12 = scmp.lt.s32.totalorder %s3224_s10, %s4153_s5 }
 0xcb4   : > { %p3226_p10 = scmp.ne.s32.totalorder %s3224_s10, %s3225_s27  ;;  %p3231_p3 = scmp.lt.s32.totalorder %s3229_s14, %s3225_s27 }
 0xcb6   : > { %p3227_p6 = pnand %p3226_p10, %p3587_p0  ;;  %p3232_p8 = por %p3231_p3, %p3230_p12 }
 0xcb8   : > { %p3228_p11 = pneg %p3227_p6 }
 0xcba   : > { %p3233_p9 = pnand %p3232_p8, %p3228_p11 }
 0xcbc   : > { %3236 = shalt.err (!%p3233_p9)
}
 0xcbd   : > { %2565 = dma.vmem_to_hbm [thread:$0]  (%p3587_p0), %s2048_s11, 256, %s2050_s24, %s3958_s28, %s4155_s13, %s4155_s13, %s3365_s25  }
 0xcbe   : > { %s2381_s22 = sshll.u32 %s3712_s29, 3  ;;  %s2486_s2 = sshll.u32 %s3525_s9, 3 }
 0xcbf   : > { %s4156_s10 = sld [smem:[#allocation63_spill]]  ;;  %s1070_s9 = scalar_lea.vmem [#allocation25], %s2381_s22 }
 0xcc0   : > { %s4157_s13 = sld [smem:[#allocation65_spill]]  ;;  %s2016_s1 = sshll.u32 %s1070_s9, 4  ;;  %s2017_s1 = int_to_ptr.vmem [resolvable:$true] %s2016_s1 }
 0xcc1   : > { %s4158_s6 = sld [smem:[#allocation64_spill]]  ;;  %s1994_s4 = scalar_lea.sflag [#allocation4], %s3712_s29 }
 0xcc5   : > { %v2719_v53 = vld [vmem:[%s4156_s10] ss:$0 sm:$0xff] }
 0xcc6   : > { %s2014_s11 = scalar_lea.hbm %s4157_s13, %s2486_s2  ;;  %s3257_s22 = scalar_lea.hbm %s4157_s13, 16 }
 0xcc7   : > { %v2720_v55 = vld [vmem:[%s4158_s6] ss:$0 sm:$0xff]  ;;  %s2018_s14 = sshll.u32 %s2014_s11, 4  ;;  %s2019_s14 = int_to_ptr.hbm [resolvable:$true] %s2018_s14 }
 0xcc8   : > { %s3251_s0 = sshra.s32 %s2019_s14, 4  ;;  %s3252_s0 = int_to_ptr.hbm [resolvable:$true] %s3251_s0 }
 0xcc9   : > { %s3253_s2 = scalar_lea.hbm %s3252_s0, 8  ;;  %p3258_p13 = scmp.lt.s32.totalorder %s3252_s0, %s4157_s13 }
 0xcca   : > { %p3254_p2 = scmp.ne.s32.totalorder %s3252_s0, %s3253_s2  ;;  %p3259_p7 = scmp.lt.s32.totalorder %s3257_s22, %s3253_s2 }
 0xccc   : > { %p3255_p5 = pnand %p3254_p2, %p3587_p0  ;;  %p3260_p10 = por %p3259_p7, %p3258_p13 }
 0xcce   : > { %p3256_p1 = pneg %p3255_p5 }
 0xcd0   : > { %p3261_p6 = pnand %p3260_p10, %p3256_p1 }
 0xd20   : > { %v1968_v45 = vpop.xlane.xlu1 %1967 }
 0xd21   : > { %v1969_v46 = vmul.f32 %v1968_v45, %v3850_v56 }
 0xd23   : > { %v1970_v47 = vadd.f32 1e-06, %v1969_v46 }
 0xd25   : > { %2759 = vrsqrt.f32 %v1970_v47  ;;  %vm1977_vm1 = vweird.f32 %v1970_v47 }
 0xd2b   : > { %v2760_v48 = vpop.eup %2759 }
 0xd2c   : > { %v1972_v49 = vmul.f32 %v2760_v48, %v1970_v47  ;;  %vm1978_vm15 = vweird.f32 %v2760_v48 }
 0xd2d   : > { %vm1979_vm2 = vmor %vm1977_vm1, %vm1978_vm15 }
 0xd2e   : > { %v1973_v50 = vmul.f32 %v2760_v48, %v1972_v49 }
 0xd30   : > { %v1974_v2 = vmul.f32 0.5, %v1973_v50 }
 0xd32   : > { %v1975_v51 = vsub.f32 1.5, %v1974_v2 }
 0xd34   : > { %v1976_v52 = vmul.f32 %v2760_v48, %v1975_v51 }
 0xd36   : > { %v1980_v56 = vsel %vm1979_vm2, %v2760_v48, %v1976_v52 }
 0xd37   : > { %v1981_v54 = vmul.f32 %v1980_v56, %v1964_v42 }
 0xd39   : > { %v1986_v57 = vmul.f32 %v2719_v53, %v1981_v54 }
 0xd3b   : > { %v1991_v58 = vadd.f32 %v2720_v55, %v1986_v57 }
 0xd3d   : > { %1992 = vst.msk [vmem:[%s1070_s9] sm:$0xff] %vm1115_vm0, %v1991_v58 }
 0xd3e   : > { %3264 = shalt.err (!%p3261_p6)
}
 0xd3f   : > { %2563 = dma.vmem_to_hbm [thread:$0]  (%p3587_p0), %s2017_s1, 128, %s2019_s14, %s1994_s4  }
 0xd40 PF: > { %s4159_s29 = sld [smem:[#allocation39_spill]] }
 0xd41   : > { %s4161_s11 = sld [smem:[#allocation40_spill]] }
 0xd46   : > { %s2064_s24 = sand.u32 1, %s4159_s29  }
 0xd47   : > { %p4162_p11 = scmp.ge.s32.totalorder %s4161_s11, 2  ;;  %s2065_s27 = scalar_lea.sflag [#allocation4], %s2064_s24 }
 0xd49   : > { %p2614_p12 = pnand %p4162_p11, %p3595_p4 }
 0xd4b   : > { %p2615_p3 = pneg %p2614_p12 }
 0xd4d   : > { %3314 = dma.done.wait (%p2615_p3), %s2065_s27, 128  }
 0xd4e   : > { %3316 = vsyncadd (%p2615_p3), %s2065_s27, 4294967168  ;;  %s4163_s6 = sadd.s32 4294967294, %s4161_s11  }
 0xd4f   : > { %s2074_s9 = sand.u32 1, %s4163_s6  }
 0xd50   : > { %s2075_s0 = scalar_lea.sflag [#allocation27], %s2074_s9 }
 0xd51   : > { %3318 = dma.done.wait (%p2615_p3), %s2075_s0, 512  }
 0xd52   : > { %3320 = vsyncadd (%p2615_p3), %s2075_s0, 4294966784  ;;  %s4164_s28 = sld [smem:[#allocation41_spill]]  ;;  %s4166_s27 = smov %s3327_s3 }
 0xd53   : > { %s4165_s30 = sld [smem:[#allocation42_spill]]  ;;  %s4167_s3 = smov %s3331_s7 }
 0xd58   : > { %p52_p0 = scmp.ge.s32.totalorder %s4164_s28, 4  }
 0xd59   : > { %s4168_s7 = smov %s4165_s30 }
 0xd5a   :  { %54 = sbr.rel (!%p52_p0) target bundleno = 39 (0x27), region = 270 }
 0xd5f   :  { %2091 = vsyncpa [#allocation3], 1 }
 0xd60   :  { %2093 = vsyncpa [#allocation3 + $0x1], 1 }
 0xd61   :  { %2094 = vsyncpa [#allocation6], 1 }
 0xd62   :  { %2096 = vsyncpa [#allocation6 + $0x1], 1 }
 0xd63   :  { %2097 = vsyncpa [#allocation9], 1 }
 0xd64   :  { %2098 = vsyncpa [#allocation12], 1 }
 0xd65   :  { %2099 = vsyncpa [#allocation15], 1 }
 0xd66   :  { %2100 = vsyncpa [#allocation18], 1 }
 0xd67   :  { %2101 = vsyncpa [#allocation21], 1 }
 0xd68   :  { %2102 = vsyncpa [#allocation24], 1 }
 0xd69   :  { %2103 = vsyncpa [#allocation4], 1 }
 0xd6a   :  { %2105 = vsyncpa [#allocation4 + $0x1], 1 }
 0xd6b   :  { %2106 = vsyncpa [#allocation27], 1 }
 0xd6c   :  { %2108 = vsyncpa [#allocation27 + $0x1], 1 }

</bundles_post_ra>
